<compile_context>
chip_gen: v6e
topology: v6e:2x2x1
jax: 0.10.0
libtpu: 0.0.40
codegen_flags: <defaults>
</compile_context>

<pallas_src>
import numpy as np
import jax
import jax.numpy as jnp
from jax.experimental import pallas as pl
from jax.experimental.pallas import tpu as pltpu

SEQ = 10
IN = 60
H = 64          # BruceLSTMMCell default hidden_size
EPS = 1e-5      # nn.LayerNorm default eps


# ----------------------------------------------------------------------------
# Kernel: one batch tile (TB, 600) -> (TB, 64)
# ----------------------------------------------------------------------------
def bruce_lstm_block_kernel(x_ref, pos_ref, pre_g_ref, pre_b_ref,
                            w_ih_ref, w_hh_ref, bias_ref,
                            ln_g_ref, ln_b_ref, o_ref,
                            xn_s, xw_s):
    TB = x_ref.shape[0]
    pre_g = pre_g_ref[...]                      # (1, IN)
    pre_b = pre_b_ref[...]                      # (1, IN)

    # ---- pos add + pre-LayerNorm, one lane-dense (TB, 60) tile per timestep.
    #      Results are written time-major into VMEM scratch so the projection
    #      below is a single big matmul (and stays off the serial h-path).
    for t in range(SEQ):
        xt = x_ref[:, t * IN:(t + 1) * IN] + pos_ref[t:t + 1, :]     # (TB, IN)
        mu = jnp.mean(xt, axis=-1, keepdims=True)
        xc = xt - mu
        var = jnp.mean(xc * xc, axis=-1, keepdims=True)
        xn_s[t * TB:(t + 1) * TB, :] = (xc * jax.lax.rsqrt(var + EPS)) * pre_g + pre_b

    # ---- hoisted input projection: ONE (SEQ*TB, IN) @ (IN, 4H) matmul, bias fused.
    xw_s[...] = (jnp.dot(xn_s[...], w_ih_ref[...],
                         preferred_element_type=jnp.float32)
                 + bias_ref[...])                                    # (SEQ*TB, 4H)

    # ---- LSTM recurrence: only h @ W_hh + cell math on the serial path.
    #      Gate column order is (i, f, o, g) — set up at init — so one fused
    #      sigmoid covers the first 3H contiguous lanes.
    w_hh = w_hh_ref[...]                                             # (H, 4H)
    h = jnp.zeros((TB, H), jnp.float32)
    c = jnp.zeros((TB, H), jnp.float32)
    for t in range(SEQ):
        gates = (xw_s[t * TB:(t + 1) * TB, :]
                 + jnp.dot(h, w_hh, preferred_element_type=jnp.float32))
        sig = 0.5 * jnp.tanh(0.5 * gates[:, 0:3 * H]) + 0.5          # i, f, o (one EUP op)
        i_g = sig[:, 0:H]
        f_g = sig[:, H:2 * H]
        o_g = sig[:, 2 * H:3 * H]
        g_g = jnp.tanh(gates[:, 3 * H:4 * H])
        c = f_g * c + i_g * g_g
        h = o_g * jnp.tanh(c)

    # ---- output LayerNorm on the last-timestep hidden state.
    mu_h = jnp.mean(h, axis=-1, keepdims=True)
    hc = h - mu_h
    var_h = jnp.mean(hc * hc, axis=-1, keepdims=True)
    o_ref[...] = (hc * jax.lax.rsqrt(var_h + EPS)) * ln_g_ref[...] + ln_b_ref[...]


# ----------------------------------------------------------------------------
# Wrapper: batch grid, resident params, remainder padding
# ----------------------------------------------------------------------------
def bruce_lstm_block(x, kp, *, tb=256):
    """x: (B, 600) -> (B, 64)."""
    B = x.shape[0]
    x = x.astype(jnp.float32)

    # batch tile: multiple of 8 sublanes, no larger than needed
    tb = int(min(tb, ((B + 7) // 8) * 8))
    tb = max(8, (tb // 8) * 8)
    nb = (B + tb - 1) // tb
    b_pad = nb * tb
    if b_pad != B:
        x = jnp.pad(x, ((0, b_pad - B), (0, 0)))     # padded rows sliced off below

    param_bytes = 4 * (SEQ * IN + 2 * IN + IN * 4 * H + H * 4 * H + 4 * H + 2 * H)
    cost = pl.CostEstimate(
        flops=int(b_pad * (2 * SEQ * (IN + H) * 4 * H + 12 * SEQ * IN)),
        transcendentals=int(b_pad * SEQ * 5 * H),
        bytes_accessed=int(4 * b_pad * (SEQ * IN + H) + param_bytes),
    )

    grid_spec = pltpu.PrefetchScalarGridSpec(
        num_scalar_prefetch=0,
        grid=(nb,),
        in_specs=[
            pl.BlockSpec((tb, SEQ * IN), lambda i: (i, 0)),     # x tile
            pl.BlockSpec((SEQ, IN),      lambda i: (0, 0)),     # pos       (resident)
            pl.BlockSpec((1, IN),        lambda i: (0, 0)),     # pre gamma (resident)
            pl.BlockSpec((1, IN),        lambda i: (0, 0)),     # pre beta  (resident)
            pl.BlockSpec((IN, 4 * H),    lambda i: (0, 0)),     # W_ih      (resident)
            pl.BlockSpec((H, 4 * H),     lambda i: (0, 0)),     # W_hh      (resident)
            pl.BlockSpec((1, 4 * H),     lambda i: (0, 0)),     # bias      (resident)
            pl.BlockSpec((1, H),         lambda i: (0, 0)),     # out gamma (resident)
            pl.BlockSpec((1, H),         lambda i: (0, 0)),     # out beta  (resident)
        ],
        out_specs=pl.BlockSpec((tb, H), lambda i: (i, 0)),
        scratch_shapes=[
            pltpu.VMEM((SEQ * tb, IN), jnp.float32),      # time-major normalized input
            pltpu.VMEM((SEQ * tb, 4 * H), jnp.float32),   # time-major pre-computed x@W_ih+b
        ],
    )

    out = pl.pallas_call(
        bruce_lstm_block_kernel,
        out_shape=jax.ShapeDtypeStruct((b_pad, H), jnp.float32),
        grid_spec=grid_spec,
        compiler_params=pltpu.CompilerParams(
            dimension_semantics=("parallel",),
            vmem_limit_bytes=32 * 1024 * 1024,
        ),
        cost_estimate=cost,
    )(x, kp["pos"], kp["pre_g"], kp["pre_b"], kp["w_ih"], kp["w_hh"],
      kp["bias"], kp["ln_g"], kp["ln_b"])

    return out[:B]


# ----------------------------------------------------------------------------
# Deterministic parameters (PyTorch layout) + kernel-layout conversion
# ----------------------------------------------------------------------------
def init_torch_params(key):
    ks = jax.random.split(key, 8)
    bound = 1.0 / np.sqrt(H)                    # PyTorch LSTM default init
    return dict(
        pos=jax.random.normal(ks[0], (SEQ, IN), jnp.float32),            # Embedding(10, 60)
        pre_g=1.0 + 0.1 * jax.random.normal(ks[1], (IN,), jnp.float32),  # LayerNorm(60) affine
        pre_b=0.1 * jax.random.normal(ks[2], (IN,), jnp.float32),
        w_ih=jax.random.uniform(ks[3], (4 * H, IN), jnp.float32, -bound, bound),  # rows i,f,g,o
        w_hh=jax.random.uniform(ks[4], (4 * H, H), jnp.float32, -bound, bound),
        b_ih=jax.random.uniform(ks[5], (4 * H,), jnp.float32, -bound, bound),
        b_hh=jax.random.uniform(ks[6], (4 * H,), jnp.float32, -bound, bound),
        ln_g=1.0 + 0.1 * jax.random.normal(ks[7], (H,), jnp.float32),    # LayerNorm(64) affine
        ln_b=jnp.zeros((H,), jnp.float32),
    )


def to_kernel_params(tp):
    # Reorder PyTorch gate blocks (i, f, g, o) -> (i, f, o, g) so the kernel can
    # apply one contiguous 3H-wide sigmoid; pre-transpose weights; fuse biases.
    def reorder_rows(w):
        return jnp.concatenate([w[:H], w[H:2 * H], w[3 * H:], w[2 * H:3 * H]], axis=0)

    b = tp["b_ih"] + tp["b_hh"]
    b = jnp.concatenate([b[:H], b[H:2 * H], b[3 * H:], b[2 * H:3 * H]])
    return dict(
        pos=tp["pos"],
        pre_g=tp["pre_g"].reshape(1, IN),
        pre_b=tp["pre_b"].reshape(1, IN),
        w_ih=reorder_rows(tp["w_ih"]).T,          # (IN, 4H), columns i|f|o|g
        w_hh=reorder_rows(tp["w_hh"]).T,          # (H, 4H)
        bias=b.reshape(1, 4 * H),
        ln_g=tp["ln_g"].reshape(1, H),
        ln_b=tp["ln_b"].reshape(1, H),
    )


# ----------------------------------------------------------------------------
# Pure-JAX reference (PyTorch semantics, gate order i, f, g, o)
# ----------------------------------------------------------------------------
def reference(x, tp):
    B = x.shape[0]
    hp = jax.lax.Precision.HIGHEST
    xr = x.reshape(B, SEQ, IN) + tp["pos"][None]
    mu = xr.mean(-1, keepdims=True)
    var = ((xr - mu) ** 2).mean(-1, keepdims=True)
    xn = (xr - mu) / jnp.sqrt(var + EPS) * tp["pre_g"] + tp["pre_b"]

    w_ih_t = tp["w_ih"].T                        # (IN, 4H)  i|f|g|o
    w_hh_t = tp["w_hh"].T                        # (H, 4H)
    b = tp["b_ih"] + tp["b_hh"]
    h = jnp.zeros((B, H), jnp.float32)
    c = jnp.zeros((B, H), jnp.float32)
    for t in range(SEQ):
        z = (jnp.dot(xn[:, t, :], w_ih_t, precision=hp)
             + jnp.dot(h, w_hh_t, precision=hp) + b)
        i_g = jax.nn.sigmoid(z[:, 0 * H:1 * H])
        f_g = jax.nn.sigmoid(z[:, 1 * H:2 * H])
        g_g = jnp.tanh(z[:, 2 * H:3 * H])
        o_g = jax.nn.sigmoid(z[:, 3 * H:4 * H])
        c = f_g * c + i_g * g_g
        h = o_g * jnp.tanh(c)

    mu = h.mean(-1, keepdims=True)
    var = ((h - mu) ** 2).mean(-1, keepdims=True)
    return (h - mu) / jnp.sqrt(var + EPS) * tp["ln_g"] + tp["ln_b"]


# ----------------------------------------------------------------------------
if __name__ == "__main__":
    key = jax.random.PRNGKey(0)
    k_param, k_x1, k_x2 = jax.random.split(key, 3)
    tp = init_torch_params(k_param)
    kp = to_kernel_params(tp)

    # Small demo shape implied by the module: batch=2, flat features=600.
    x_small = jax.random.normal(k_x1, (2, SEQ * IN), jnp.float32)
    out_small = jax.block_until_ready(bruce_lstm_block(x_small, kp))
    ref_small = jax.block_until_ready(reference(x_small, tp))
    assert out_small.shape == (2, H)
    np.testing.assert_allclose(np.asarray(out_small), np.asarray(ref_small),
                               rtol=2e-3, atol=2e-3)

    # Exercise the batch grid + remainder padding path (2 grid steps of TB=64).
    x_big = jax.random.normal(k_x2, (100, SEQ * IN), jnp.float32)
    out_big = jax.block_until_ready(bruce_lstm_block(x_big, kp, tb=64))
    ref_big = jax.block_until_ready(reference(x_big, tp))
    assert out_big.shape == (100, H)
    np.testing.assert_allclose(np.asarray(out_big), np.asarray(ref_big),
                               rtol=2e-3, atol=2e-3)

    print("KERNEL_OK")
</pallas_src>

<mosaic_0001>
module attributes {stable_mosaic.version = 11 : i64} {
  func.func @bruce_lstm_block_kernel(%arg0: i32, %arg1: memref<8x600xf32, #tpu.memory_space<vmem>>, %arg2: memref<10x60xf32, #tpu.memory_space<vmem>>, %arg3: memref<1x60xf32, #tpu.memory_space<vmem>>, %arg4: memref<1x60xf32, #tpu.memory_space<vmem>>, %arg5: memref<60x256xf32, #tpu.memory_space<vmem>>, %arg6: memref<64x256xf32, #tpu.memory_space<vmem>>, %arg7: memref<1x256xf32, #tpu.memory_space<vmem>>, %arg8: memref<1x64xf32, #tpu.memory_space<vmem>>, %arg9: memref<1x64xf32, #tpu.memory_space<vmem>>, %arg10: memref<8x64xf32, #tpu.memory_space<vmem>>, %arg11: memref<80x60xf32, #tpu.memory_space<vmem>>, %arg12: memref<80x256xf32, #tpu.memory_space<vmem>>) attributes {dimension_semantics = [#tpu.dimension_semantics<parallel>], iteration_bounds = array<i64: 1>, scalar_prefetch = 0 : i64, scratch_operands = 2 : i64, tpu.core_type = #tpu.core_type<tc>, window_params = [{transform_indices = @transform_0, window_bounds = array<i64: 8, 600>}, {pipeline_mode = #tpu.pipeline_mode<synchronous>, transform_indices = @transform_1, window_bounds = array<i64: 10, 60>}, {pipeline_mode = #tpu.pipeline_mode<synchronous>, transform_indices = @transform_2, window_bounds = array<i64: 1, 60>}, {pipeline_mode = #tpu.pipeline_mode<synchronous>, transform_indices = @transform_3, window_bounds = array<i64: 1, 60>}, {pipeline_mode = #tpu.pipeline_mode<synchronous>, transform_indices = @transform_4, window_bounds = array<i64: 60, 256>}, {pipeline_mode = #tpu.pipeline_mode<synchronous>, transform_indices = @transform_5, window_bounds = array<i64: 64, 256>}, {pipeline_mode = #tpu.pipeline_mode<synchronous>, transform_indices = @transform_6, window_bounds = array<i64: 1, 256>}, {pipeline_mode = #tpu.pipeline_mode<synchronous>, transform_indices = @transform_7, window_bounds = array<i64: 1, 64>}, {pipeline_mode = #tpu.pipeline_mode<synchronous>, transform_indices = @transform_8, window_bounds = array<i64: 1, 64>}, {transform_indices = @transform_9, window_bounds = array<i64: 8, 64>}]} {
    %c0 = arith.constant 0 : index
    %c0_0 = arith.constant 0 : index
    %0 = vector.load %arg3[%c0, %c0_0] : memref<1x60xf32, #tpu.memory_space<vmem>>, vector<1x60xf32>
    %c0_1 = arith.constant 0 : index
    %c0_2 = arith.constant 0 : index
    %1 = vector.load %arg4[%c0_1, %c0_2] : memref<1x60xf32, #tpu.memory_space<vmem>>, vector<1x60xf32>
    %c0_3 = arith.constant 0 : index
    %c0_4 = arith.constant 0 : index
    %2 = vector.load %arg1[%c0_3, %c0_4] : memref<8x600xf32, #tpu.memory_space<vmem>>, vector<8x60xf32>
    %c0_5 = arith.constant 0 : index
    %c0_6 = arith.constant 0 : index
    %3 = vector.load %arg2[%c0_5, %c0_6] : memref<10x60xf32, #tpu.memory_space<vmem>>, vector<1x60xf32>
    %4 = vector.broadcast %3 : vector<1x60xf32> to vector<8x60xf32>
    %5 = arith.addf %2, %4 : vector<8x60xf32>
    %cst = arith.constant dense<0.000000e+00> : vector<8xf32>
    %6 = vector.multi_reduction <add>, %5, %cst [1] : vector<8x60xf32> to vector<8xf32>
    %7 = vector.shape_cast %6 : vector<8xf32> to vector<8x1xf32>
    %cst_7 = arith.constant 6.000000e+01 : f32
    %8 = vector.broadcast %cst_7 : f32 to vector<8x1xf32>
    %9 = arith.divf %7, %8 : vector<8x1xf32>
    %10 = vector.broadcast %9 : vector<8x1xf32> to vector<8x60xf32>
    %11 = arith.subf %5, %10 : vector<8x60xf32>
    %12 = arith.mulf %11, %11 : vector<8x60xf32>
    %cst_8 = arith.constant dense<0.000000e+00> : vector<8xf32>
    %13 = vector.multi_reduction <add>, %12, %cst_8 [1] : vector<8x60xf32> to vector<8xf32>
    %14 = vector.shape_cast %13 : vector<8xf32> to vector<8x1xf32>
    %cst_9 = arith.constant 6.000000e+01 : f32
    %15 = vector.broadcast %cst_9 : f32 to vector<8x1xf32>
    %16 = arith.divf %14, %15 : vector<8x1xf32>
    %cst_10 = arith.constant 9.99999974E-6 : f32
    %17 = vector.broadcast %cst_10 : f32 to vector<8x1xf32>
    %18 = arith.addf %16, %17 : vector<8x1xf32>
    %19 = math.rsqrt %18 : vector<8x1xf32>
    %20 = vector.broadcast %19 : vector<8x1xf32> to vector<8x60xf32>
    %21 = arith.mulf %11, %20 : vector<8x60xf32>
    %22 = vector.broadcast %0 : vector<1x60xf32> to vector<8x60xf32>
    %23 = arith.mulf %21, %22 : vector<8x60xf32>
    %24 = vector.broadcast %1 : vector<1x60xf32> to vector<8x60xf32>
    %25 = arith.addf %23, %24 : vector<8x60xf32>
    %c0_11 = arith.constant 0 : index
    %c0_12 = arith.constant 0 : index
    %26 = vector.load %arg11[%c0_11, %c0_12] : memref<80x60xf32, #tpu.memory_space<vmem>>, vector<8x60xf32>
    tpu.vector_store %arg11[%c0_11, %c0_12], %25 {strides = array<i32>} : memref<80x60xf32, #tpu.memory_space<vmem>>, vector<8x60xf32>,
    %c0_13 = arith.constant 0 : index
    %c60 = arith.constant 60 : index
    %27 = vector.load %arg1[%c0_13, %c60] : memref<8x600xf32, #tpu.memory_space<vmem>>, vector<8x60xf32>
    %c1 = arith.constant 1 : index
    %c0_14 = arith.constant 0 : index
    %28 = vector.load %arg2[%c1, %c0_14] : memref<10x60xf32, #tpu.memory_space<vmem>>, vector<1x60xf32>
    %29 = vector.broadcast %28 : vector<1x60xf32> to vector<8x60xf32>
    %30 = arith.addf %27, %29 : vector<8x60xf32>
    %cst_15 = arith.constant dense<0.000000e+00> : vector<8xf32>
    %31 = vector.multi_reduction <add>, %30, %cst_15 [1] : vector<8x60xf32> to vector<8xf32>
    %32 = vector.shape_cast %31 : vector<8xf32> to vector<8x1xf32>
    %cst_16 = arith.constant 6.000000e+01 : f32
    %33 = vector.broadcast %cst_16 : f32 to vector<8x1xf32>
    %34 = arith.divf %32, %33 : vector<8x1xf32>
    %35 = vector.broadcast %34 : vector<8x1xf32> to vector<8x60xf32>
    %36 = arith.subf %30, %35 : vector<8x60xf32>
    %37 = arith.mulf %36, %36 : vector<8x60xf32>
    %cst_17 = arith.constant dense<0.000000e+00> : vector<8xf32>
    %38 = vector.multi_reduction <add>, %37, %cst_17 [1] : vector<8x60xf32> to vector<8xf32>
    %39 = vector.shape_cast %38 : vector<8xf32> to vector<8x1xf32>
    %cst_18 = arith.constant 6.000000e+01 : f32
    %40 = vector.broadcast %cst_18 : f32 to vector<8x1xf32>
    %41 = arith.divf %39, %40 : vector<8x1xf32>
    %cst_19 = arith.constant 9.99999974E-6 : f32
    %42 = vector.broadcast %cst_19 : f32 to vector<8x1xf32>
    %43 = arith.addf %41, %42 : vector<8x1xf32>
    %44 = math.rsqrt %43 : vector<8x1xf32>
    %45 = vector.broadcast %44 : vector<8x1xf32> to vector<8x60xf32>
    %46 = arith.mulf %36, %45 : vector<8x60xf32>
    %47 = vector.broadcast %0 : vector<1x60xf32> to vector<8x60xf32>
    %48 = arith.mulf %46, %47 : vector<8x60xf32>
    %49 = vector.broadcast %1 : vector<1x60xf32> to vector<8x60xf32>
    %50 = arith.addf %48, %49 : vector<8x60xf32>
    %c8 = arith.constant 8 : index
    %c0_20 = arith.constant 0 : index
    %51 = vector.load %arg11[%c8, %c0_20] : memref<80x60xf32, #tpu.memory_space<vmem>>, vector<8x60xf32>
    tpu.vector_store %arg11[%c8, %c0_20], %50 {strides = array<i32>} : memref<80x60xf32, #tpu.memory_space<vmem>>, vector<8x60xf32>,
    %c0_21 = arith.constant 0 : index
    %c120 = arith.constant 120 : index
    %52 = vector.load %arg1[%c0_21, %c120] : memref<8x600xf32, #tpu.memory_space<vmem>>, vector<8x60xf32>
    %c2 = arith.constant 2 : index
    %c0_22 = arith.constant 0 : index
    %53 = vector.load %arg2[%c2, %c0_22] : memref<10x60xf32, #tpu.memory_space<vmem>>, vector<1x60xf32>
    %54 = vector.broadcast %53 : vector<1x60xf32> to vector<8x60xf32>
    %55 = arith.addf %52, %54 : vector<8x60xf32>
    %cst_23 = arith.constant dense<0.000000e+00> : vector<8xf32>
    %56 = vector.multi_reduction <add>, %55, %cst_23 [1] : vector<8x60xf32> to vector<8xf32>
    %57 = vector.shape_cast %56 : vector<8xf32> to vector<8x1xf32>
    %cst_24 = arith.constant 6.000000e+01 : f32
    %58 = vector.broadcast %cst_24 : f32 to vector<8x1xf32>
    %59 = arith.divf %57, %58 : vector<8x1xf32>
    %60 = vector.broadcast %59 : vector<8x1xf32> to vector<8x60xf32>
    %61 = arith.subf %55, %60 : vector<8x60xf32>
    %62 = arith.mulf %61, %61 : vector<8x60xf32>
    %cst_25 = arith.constant dense<0.000000e+00> : vector<8xf32>
    %63 = vector.multi_reduction <add>, %62, %cst_25 [1] : vector<8x60xf32> to vector<8xf32>
    %64 = vector.shape_cast %63 : vector<8xf32> to vector<8x1xf32>
    %cst_26 = arith.constant 6.000000e+01 : f32
    %65 = vector.broadcast %cst_26 : f32 to vector<8x1xf32>
    %66 = arith.divf %64, %65 : vector<8x1xf32>
    %cst_27 = arith.constant 9.99999974E-6 : f32
    %67 = vector.broadcast %cst_27 : f32 to vector<8x1xf32>
    %68 = arith.addf %66, %67 : vector<8x1xf32>
    %69 = math.rsqrt %68 : vector<8x1xf32>
    %70 = vector.broadcast %69 : vector<8x1xf32> to vector<8x60xf32>
    %71 = arith.mulf %61, %70 : vector<8x60xf32>
    %72 = vector.broadcast %0 : vector<1x60xf32> to vector<8x60xf32>
    %73 = arith.mulf %71, %72 : vector<8x60xf32>
    %74 = vector.broadcast %1 : vector<1x60xf32> to vector<8x60xf32>
    %75 = arith.addf %73, %74 : vector<8x60xf32>
    %c16 = arith.constant 16 : index
    %c0_28 = arith.constant 0 : index
    %76 = vector.load %arg11[%c16, %c0_28] : memref<80x60xf32, #tpu.memory_space<vmem>>, vector<8x60xf32>
    tpu.vector_store %arg11[%c16, %c0_28], %75 {strides = array<i32>} : memref<80x60xf32, #tpu.memory_space<vmem>>, vector<8x60xf32>,
    %c0_29 = arith.constant 0 : index
    %c180 = arith.constant 180 : index
    %77 = vector.load %arg1[%c0_29, %c180] : memref<8x600xf32, #tpu.memory_space<vmem>>, vector<8x60xf32>
    %c3 = arith.constant 3 : index
    %c0_30 = arith.constant 0 : index
    %78 = vector.load %arg2[%c3, %c0_30] : memref<10x60xf32, #tpu.memory_space<vmem>>, vector<1x60xf32>
    %79 = vector.broadcast %78 : vector<1x60xf32> to vector<8x60xf32>
    %80 = arith.addf %77, %79 : vector<8x60xf32>
    %cst_31 = arith.constant dense<0.000000e+00> : vector<8xf32>
    %81 = vector.multi_reduction <add>, %80, %cst_31 [1] : vector<8x60xf32> to vector<8xf32>
    %82 = vector.shape_cast %81 : vector<8xf32> to vector<8x1xf32>
    %cst_32 = arith.constant 6.000000e+01 : f32
    %83 = vector.broadcast %cst_32 : f32 to vector<8x1xf32>
    %84 = arith.divf %82, %83 : vector<8x1xf32>
    %85 = vector.broadcast %84 : vector<8x1xf32> to vector<8x60xf32>
    %86 = arith.subf %80, %85 : vector<8x60xf32>
    %87 = arith.mulf %86, %86 : vector<8x60xf32>
    %cst_33 = arith.constant dense<0.000000e+00> : vector<8xf32>
    %88 = vector.multi_reduction <add>, %87, %cst_33 [1] : vector<8x60xf32> to vector<8xf32>
    %89 = vector.shape_cast %88 : vector<8xf32> to vector<8x1xf32>
    %cst_34 = arith.constant 6.000000e+01 : f32
    %90 = vector.broadcast %cst_34 : f32 to vector<8x1xf32>
    %91 = arith.divf %89, %90 : vector<8x1xf32>
    %cst_35 = arith.constant 9.99999974E-6 : f32
    %92 = vector.broadcast %cst_35 : f32 to vector<8x1xf32>
    %93 = arith.addf %91, %92 : vector<8x1xf32>
    %94 = math.rsqrt %93 : vector<8x1xf32>
    %95 = vector.broadcast %94 : vector<8x1xf32> to vector<8x60xf32>
    %96 = arith.mulf %86, %95 : vector<8x60xf32>
    %97 = vector.broadcast %0 : vector<1x60xf32> to vector<8x60xf32>
    %98 = arith.mulf %96, %97 : vector<8x60xf32>
    %99 = vector.broadcast %1 : vector<1x60xf32> to vector<8x60xf32>
    %100 = arith.addf %98, %99 : vector<8x60xf32>
    %c24 = arith.constant 24 : index
    %c0_36 = arith.constant 0 : index
    %101 = vector.load %arg11[%c24, %c0_36] : memref<80x60xf32, #tpu.memory_space<vmem>>, vector<8x60xf32>
    tpu.vector_store %arg11[%c24, %c0_36], %100 {strides = array<i32>} : memref<80x60xf32, #tpu.memory_space<vmem>>, vector<8x60xf32>,
    %c0_37 = arith.constant 0 : index
    %c240 = arith.constant 240 : index
    %102 = vector.load %arg1[%c0_37, %c240] : memref<8x600xf32, #tpu.memory_space<vmem>>, vector<8x60xf32>
    %c4 = arith.constant 4 : index
    %c0_38 = arith.constant 0 : index
    %103 = vector.load %arg2[%c4, %c0_38] : memref<10x60xf32, #tpu.memory_space<vmem>>, vector<1x60xf32>
    %104 = vector.broadcast %103 : vector<1x60xf32> to vector<8x60xf32>
    %105 = arith.addf %102, %104 : vector<8x60xf32>
    %cst_39 = arith.constant dense<0.000000e+00> : vector<8xf32>
    %106 = vector.multi_reduction <add>, %105, %cst_39 [1] : vector<8x60xf32> to vector<8xf32>
    %107 = vector.shape_cast %106 : vector<8xf32> to vector<8x1xf32>
    %cst_40 = arith.constant 6.000000e+01 : f32
    %108 = vector.broadcast %cst_40 : f32 to vector<8x1xf32>
    %109 = arith.divf %107, %108 : vector<8x1xf32>
    %110 = vector.broadcast %109 : vector<8x1xf32> to vector<8x60xf32>
    %111 = arith.subf %105, %110 : vector<8x60xf32>
    %112 = arith.mulf %111, %111 : vector<8x60xf32>
    %cst_41 = arith.constant dense<0.000000e+00> : vector<8xf32>
    %113 = vector.multi_reduction <add>, %112, %cst_41 [1] : vector<8x60xf32> to vector<8xf32>
    %114 = vector.shape_cast %113 : vector<8xf32> to vector<8x1xf32>
    %cst_42 = arith.constant 6.000000e+01 : f32
    %115 = vector.broadcast %cst_42 : f32 to vector<8x1xf32>
    %116 = arith.divf %114, %115 : vector<8x1xf32>
    %cst_43 = arith.constant 9.99999974E-6 : f32
    %117 = vector.broadcast %cst_43 : f32 to vector<8x1xf32>
    %118 = arith.addf %116, %117 : vector<8x1xf32>
    %119 = math.rsqrt %118 : vector<8x1xf32>
    %120 = vector.broadcast %119 : vector<8x1xf32> to vector<8x60xf32>
    %121 = arith.mulf %111, %120 : vector<8x60xf32>
    %122 = vector.broadcast %0 : vector<1x60xf32> to vector<8x60xf32>
    %123 = arith.mulf %121, %122 : vector<8x60xf32>
    %124 = vector.broadcast %1 : vector<1x60xf32> to vector<8x60xf32>
    %125 = arith.addf %123, %124 : vector<8x60xf32>
    %c32 = arith.constant 32 : index
    %c0_44 = arith.constant 0 : index
    %126 = vector.load %arg11[%c32, %c0_44] : memref<80x60xf32, #tpu.memory_space<vmem>>, vector<8x60xf32>
    tpu.vector_store %arg11[%c32, %c0_44], %125 {strides = array<i32>} : memref<80x60xf32, #tpu.memory_space<vmem>>, vector<8x60xf32>,
    %c0_45 = arith.constant 0 : index
    %c300 = arith.constant 300 : index
    %127 = vector.load %arg1[%c0_45, %c300] : memref<8x600xf32, #tpu.memory_space<vmem>>, vector<8x60xf32>
    %c5 = arith.constant 5 : index
    %c0_46 = arith.constant 0 : index
    %128 = vector.load %arg2[%c5, %c0_46] : memref<10x60xf32, #tpu.memory_space<vmem>>, vector<1x60xf32>
    %129 = vector.broadcast %128 : vector<1x60xf32> to vector<8x60xf32>
    %130 = arith.addf %127, %129 : vector<8x60xf32>
    %cst_47 = arith.constant dense<0.000000e+00> : vector<8xf32>
    %131 = vector.multi_reduction <add>, %130, %cst_47 [1] : vector<8x60xf32> to vector<8xf32>
    %132 = vector.shape_cast %131 : vector<8xf32> to vector<8x1xf32>
    %cst_48 = arith.constant 6.000000e+01 : f32
    %133 = vector.broadcast %cst_48 : f32 to vector<8x1xf32>
    %134 = arith.divf %132, %133 : vector<8x1xf32>
    %135 = vector.broadcast %134 : vector<8x1xf32> to vector<8x60xf32>
    %136 = arith.subf %130, %135 : vector<8x60xf32>
    %137 = arith.mulf %136, %136 : vector<8x60xf32>
    %cst_49 = arith.constant dense<0.000000e+00> : vector<8xf32>
    %138 = vector.multi_reduction <add>, %137, %cst_49 [1] : vector<8x60xf32> to vector<8xf32>
    %139 = vector.shape_cast %138 : vector<8xf32> to vector<8x1xf32>
    %cst_50 = arith.constant 6.000000e+01 : f32
    %140 = vector.broadcast %cst_50 : f32 to vector<8x1xf32>
    %141 = arith.divf %139, %140 : vector<8x1xf32>
    %cst_51 = arith.constant 9.99999974E-6 : f32
    %142 = vector.broadcast %cst_51 : f32 to vector<8x1xf32>
    %143 = arith.addf %141, %142 : vector<8x1xf32>
    %144 = math.rsqrt %143 : vector<8x1xf32>
    %145 = vector.broadcast %144 : vector<8x1xf32> to vector<8x60xf32>
    %146 = arith.mulf %136, %145 : vector<8x60xf32>
    %147 = vector.broadcast %0 : vector<1x60xf32> to vector<8x60xf32>
    %148 = arith.mulf %146, %147 : vector<8x60xf32>
    %149 = vector.broadcast %1 : vector<1x60xf32> to vector<8x60xf32>
    %150 = arith.addf %148, %149 : vector<8x60xf32>
    %c40 = arith.constant 40 : index
    %c0_52 = arith.constant 0 : index
    %151 = vector.load %arg11[%c40, %c0_52] : memref<80x60xf32, #tpu.memory_space<vmem>>, vector<8x60xf32>
    tpu.vector_store %arg11[%c40, %c0_52], %150 {strides = array<i32>} : memref<80x60xf32, #tpu.memory_space<vmem>>, vector<8x60xf32>,
    %c0_53 = arith.constant 0 : index
    %c360 = arith.constant 360 : index
    %152 = vector.load %arg1[%c0_53, %c360] : memref<8x600xf32, #tpu.memory_space<vmem>>, vector<8x60xf32>
    %c6 = arith.constant 6 : index
    %c0_54 = arith.constant 0 : index
    %153 = vector.load %arg2[%c6, %c0_54] : memref<10x60xf32, #tpu.memory_space<vmem>>, vector<1x60xf32>
    %154 = vector.broadcast %153 : vector<1x60xf32> to vector<8x60xf32>
    %155 = arith.addf %152, %154 : vector<8x60xf32>
    %cst_55 = arith.constant dense<0.000000e+00> : vector<8xf32>
    %156 = vector.multi_reduction <add>, %155, %cst_55 [1] : vector<8x60xf32> to vector<8xf32>
    %157 = vector.shape_cast %156 : vector<8xf32> to vector<8x1xf32>
    %cst_56 = arith.constant 6.000000e+01 : f32
    %158 = vector.broadcast %cst_56 : f32 to vector<8x1xf32>
    %159 = arith.divf %157, %158 : vector<8x1xf32>
    %160 = vector.broadcast %159 : vector<8x1xf32> to vector<8x60xf32>
    %161 = arith.subf %155, %160 : vector<8x60xf32>
    %162 = arith.mulf %161, %161 : vector<8x60xf32>
    %cst_57 = arith.constant dense<0.000000e+00> : vector<8xf32>
    %163 = vector.multi_reduction <add>, %162, %cst_57 [1] : vector<8x60xf32> to vector<8xf32>
    %164 = vector.shape_cast %163 : vector<8xf32> to vector<8x1xf32>
    %cst_58 = arith.constant 6.000000e+01 : f32
    %165 = vector.broadcast %cst_58 : f32 to vector<8x1xf32>
    %166 = arith.divf %164, %165 : vector<8x1xf32>
    %cst_59 = arith.constant 9.99999974E-6 : f32
    %167 = vector.broadcast %cst_59 : f32 to vector<8x1xf32>
    %168 = arith.addf %166, %167 : vector<8x1xf32>
    %169 = math.rsqrt %168 : vector<8x1xf32>
    %170 = vector.broadcast %169 : vector<8x1xf32> to vector<8x60xf32>
    %171 = arith.mulf %161, %170 : vector<8x60xf32>
    %172 = vector.broadcast %0 : vector<1x60xf32> to vector<8x60xf32>
    %173 = arith.mulf %171, %172 : vector<8x60xf32>
    %174 = vector.broadcast %1 : vector<1x60xf32> to vector<8x60xf32>
    %175 = arith.addf %173, %174 : vector<8x60xf32>
    %c48 = arith.constant 48 : index
    %c0_60 = arith.constant 0 : index
    %176 = vector.load %arg11[%c48, %c0_60] : memref<80x60xf32, #tpu.memory_space<vmem>>, vector<8x60xf32>
    tpu.vector_store %arg11[%c48, %c0_60], %175 {strides = array<i32>} : memref<80x60xf32, #tpu.memory_space<vmem>>, vector<8x60xf32>,
    %c0_61 = arith.constant 0 : index
    %c420 = arith.constant 420 : index
    %177 = vector.load %arg1[%c0_61, %c420] : memref<8x600xf32, #tpu.memory_space<vmem>>, vector<8x60xf32>
    %c7 = arith.constant 7 : index
    %c0_62 = arith.constant 0 : index
    %178 = vector.load %arg2[%c7, %c0_62] : memref<10x60xf32, #tpu.memory_space<vmem>>, vector<1x60xf32>
    %179 = vector.broadcast %178 : vector<1x60xf32> to vector<8x60xf32>
    %180 = arith.addf %177, %179 : vector<8x60xf32>
    %cst_63 = arith.constant dense<0.000000e+00> : vector<8xf32>
    %181 = vector.multi_reduction <add>, %180, %cst_63 [1] : vector<8x60xf32> to vector<8xf32>
    %182 = vector.shape_cast %181 : vector<8xf32> to vector<8x1xf32>
    %cst_64 = arith.constant 6.000000e+01 : f32
    %183 = vector.broadcast %cst_64 : f32 to vector<8x1xf32>
    %184 = arith.divf %182, %183 : vector<8x1xf32>
    %185 = vector.broadcast %184 : vector<8x1xf32> to vector<8x60xf32>
    %186 = arith.subf %180, %185 : vector<8x60xf32>
    %187 = arith.mulf %186, %186 : vector<8x60xf32>
    %cst_65 = arith.constant dense<0.000000e+00> : vector<8xf32>
    %188 = vector.multi_reduction <add>, %187, %cst_65 [1] : vector<8x60xf32> to vector<8xf32>
    %189 = vector.shape_cast %188 : vector<8xf32> to vector<8x1xf32>
    %cst_66 = arith.constant 6.000000e+01 : f32
    %190 = vector.broadcast %cst_66 : f32 to vector<8x1xf32>
    %191 = arith.divf %189, %190 : vector<8x1xf32>
    %cst_67 = arith.constant 9.99999974E-6 : f32
    %192 = vector.broadcast %cst_67 : f32 to vector<8x1xf32>
    %193 = arith.addf %191, %192 : vector<8x1xf32>
    %194 = math.rsqrt %193 : vector<8x1xf32>
    %195 = vector.broadcast %194 : vector<8x1xf32> to vector<8x60xf32>
    %196 = arith.mulf %186, %195 : vector<8x60xf32>
    %197 = vector.broadcast %0 : vector<1x60xf32> to vector<8x60xf32>
    %198 = arith.mulf %196, %197 : vector<8x60xf32>
    %199 = vector.broadcast %1 : vector<1x60xf32> to vector<8x60xf32>
    %200 = arith.addf %198, %199 : vector<8x60xf32>
    %c56 = arith.constant 56 : index
    %c0_68 = arith.constant 0 : index
    %201 = vector.load %arg11[%c56, %c0_68] : memref<80x60xf32, #tpu.memory_space<vmem>>, vector<8x60xf32>
    tpu.vector_store %arg11[%c56, %c0_68], %200 {strides = array<i32>} : memref<80x60xf32, #tpu.memory_space<vmem>>, vector<8x60xf32>,
    %c0_69 = arith.constant 0 : index
    %c480 = arith.constant 480 : index
    %202 = vector.load %arg1[%c0_69, %c480] : memref<8x600xf32, #tpu.memory_space<vmem>>, vector<8x60xf32>
    %c8_70 = arith.constant 8 : index
    %c0_71 = arith.constant 0 : index
    %203 = vector.load %arg2[%c8_70, %c0_71] : memref<10x60xf32, #tpu.memory_space<vmem>>, vector<1x60xf32>
    %204 = vector.broadcast %203 : vector<1x60xf32> to vector<8x60xf32>
    %205 = arith.addf %202, %204 : vector<8x60xf32>
    %cst_72 = arith.constant dense<0.000000e+00> : vector<8xf32>
    %206 = vector.multi_reduction <add>, %205, %cst_72 [1] : vector<8x60xf32> to vector<8xf32>
    %207 = vector.shape_cast %206 : vector<8xf32> to vector<8x1xf32>
    %cst_73 = arith.constant 6.000000e+01 : f32
    %208 = vector.broadcast %cst_73 : f32 to vector<8x1xf32>
    %209 = arith.divf %207, %208 : vector<8x1xf32>
    %210 = vector.broadcast %209 : vector<8x1xf32> to vector<8x60xf32>
    %211 = arith.subf %205, %210 : vector<8x60xf32>
    %212 = arith.mulf %211, %211 : vector<8x60xf32>
    %cst_74 = arith.constant dense<0.000000e+00> : vector<8xf32>
    %213 = vector.multi_reduction <add>, %212, %cst_74 [1] : vector<8x60xf32> to vector<8xf32>
    %214 = vector.shape_cast %213 : vector<8xf32> to vector<8x1xf32>
    %cst_75 = arith.constant 6.000000e+01 : f32
    %215 = vector.broadcast %cst_75 : f32 to vector<8x1xf32>
    %216 = arith.divf %214, %215 : vector<8x1xf32>
    %cst_76 = arith.constant 9.99999974E-6 : f32
    %217 = vector.broadcast %cst_76 : f32 to vector<8x1xf32>
    %218 = arith.addf %216, %217 : vector<8x1xf32>
    %219 = math.rsqrt %218 : vector<8x1xf32>
    %220 = vector.broadcast %219 : vector<8x1xf32> to vector<8x60xf32>
    %221 = arith.mulf %211, %220 : vector<8x60xf32>
    %222 = vector.broadcast %0 : vector<1x60xf32> to vector<8x60xf32>
    %223 = arith.mulf %221, %222 : vector<8x60xf32>
    %224 = vector.broadcast %1 : vector<1x60xf32> to vector<8x60xf32>
    %225 = arith.addf %223, %224 : vector<8x60xf32>
    %c64 = arith.constant 64 : index
    %c0_77 = arith.constant 0 : index
    %226 = vector.load %arg11[%c64, %c0_77] : memref<80x60xf32, #tpu.memory_space<vmem>>, vector<8x60xf32>
    tpu.vector_store %arg11[%c64, %c0_77], %225 {strides = array<i32>} : memref<80x60xf32, #tpu.memory_space<vmem>>, vector<8x60xf32>,
    %c0_78 = arith.constant 0 : index
    %c540 = arith.constant 540 : index
    %227 = vector.load %arg1[%c0_78, %c540] : memref<8x600xf32, #tpu.memory_space<vmem>>, vector<8x60xf32>
    %c9 = arith.constant 9 : index
    %c0_79 = arith.constant 0 : index
    %228 = vector.load %arg2[%c9, %c0_79] : memref<10x60xf32, #tpu.memory_space<vmem>>, vector<1x60xf32>
    %229 = vector.broadcast %228 : vector<1x60xf32> to vector<8x60xf32>
    %230 = arith.addf %227, %229 : vector<8x60xf32>
    %cst_80 = arith.constant dense<0.000000e+00> : vector<8xf32>
    %231 = vector.multi_reduction <add>, %230, %cst_80 [1] : vector<8x60xf32> to vector<8xf32>
    %232 = vector.shape_cast %231 : vector<8xf32> to vector<8x1xf32>
    %cst_81 = arith.constant 6.000000e+01 : f32
    %233 = vector.broadcast %cst_81 : f32 to vector<8x1xf32>
    %234 = arith.divf %232, %233 : vector<8x1xf32>
    %235 = vector.broadcast %234 : vector<8x1xf32> to vector<8x60xf32>
    %236 = arith.subf %230, %235 : vector<8x60xf32>
    %237 = arith.mulf %236, %236 : vector<8x60xf32>
    %cst_82 = arith.constant dense<0.000000e+00> : vector<8xf32>
    %238 = vector.multi_reduction <add>, %237, %cst_82 [1] : vector<8x60xf32> to vector<8xf32>
    %239 = vector.shape_cast %238 : vector<8xf32> to vector<8x1xf32>
    %cst_83 = arith.constant 6.000000e+01 : f32
    %240 = vector.broadcast %cst_83 : f32 to vector<8x1xf32>
    %241 = arith.divf %239, %240 : vector<8x1xf32>
    %cst_84 = arith.constant 9.99999974E-6 : f32
    %242 = vector.broadcast %cst_84 : f32 to vector<8x1xf32>
    %243 = arith.addf %241, %242 : vector<8x1xf32>
    %244 = math.rsqrt %243 : vector<8x1xf32>
    %245 = vector.broadcast %244 : vector<8x1xf32> to vector<8x60xf32>
    %246 = arith.mulf %236, %245 : vector<8x60xf32>
    %247 = vector.broadcast %0 : vector<1x60xf32> to vector<8x60xf32>
    %248 = arith.mulf %246, %247 : vector<8x60xf32>
    %249 = vector.broadcast %1 : vector<1x60xf32> to vector<8x60xf32>
    %250 = arith.addf %248, %249 : vector<8x60xf32>
    %c72 = arith.constant 72 : index
    %c0_85 = arith.constant 0 : index
    %251 = vector.load %arg11[%c72, %c0_85] : memref<80x60xf32, #tpu.memory_space<vmem>>, vector<8x60xf32>
    tpu.vector_store %arg11[%c72, %c0_85], %250 {strides = array<i32>} : memref<80x60xf32, #tpu.memory_space<vmem>>, vector<8x60xf32>,
    %c0_86 = arith.constant 0 : index
    %c0_87 = arith.constant 0 : index
    %252 = vector.load %arg11[%c0_86, %c0_87] : memref<80x60xf32, #tpu.memory_space<vmem>>, vector<80x60xf32>
    %c0_88 = arith.constant 0 : index
    %c0_89 = arith.constant 0 : index
    %253 = vector.load %arg5[%c0_88, %c0_89] : memref<60x256xf32, #tpu.memory_space<vmem>>, vector<60x256xf32>
    %cst_90 = arith.constant dense<0.000000e+00> : vector<80x256xf32>
    %254 = tpu.matmul %252, %253, %cst_90 {dimension_numbers = #tpu.dot_dimension_numbers<[1], [0], [0], [1], [0, 0, 1, 1], [], []>} : vector<80x60xf32>, vector<60x256xf32>, vector<80x256xf32> -> vector<80x256xf32>
    %c0_91 = arith.constant 0 : index
    %c0_92 = arith.constant 0 : index
    %255 = vector.load %arg7[%c0_91, %c0_92] : memref<1x256xf32, #tpu.memory_space<vmem>>, vector<1x256xf32>
    %256 = vector.broadcast %255 : vector<1x256xf32> to vector<80x256xf32>
    %257 = arith.addf %254, %256 : vector<80x256xf32>
    %c0_93 = arith.constant 0 : index
    %c0_94 = arith.constant 0 : index
    %258 = vector.load %arg12[%c0_93, %c0_94] : memref<80x256xf32, #tpu.memory_space<vmem>>, vector<80x256xf32>
    tpu.vector_store %arg12[%c0_93, %c0_94], %257 {strides = array<i32>} : memref<80x256xf32, #tpu.memory_space<vmem>>, vector<80x256xf32>,
    %c0_95 = arith.constant 0 : index
    %c0_96 = arith.constant 0 : index
    %259 = vector.load %arg6[%c0_95, %c0_96] : memref<64x256xf32, #tpu.memory_space<vmem>>, vector<64x256xf32>
    %cst_97 = arith.constant 0.000000e+00 : f32
    %260 = vector.broadcast %cst_97 : f32 to vector<8x64xf32>
    %cst_98 = arith.constant 0.000000e+00 : f32
    %261 = vector.broadcast %cst_98 : f32 to vector<8x64xf32>
    %c0_99 = arith.constant 0 : index
    %c0_100 = arith.constant 0 : index
    %262 = vector.load %arg12[%c0_99, %c0_100] : memref<80x256xf32, #tpu.memory_space<vmem>>, vector<8x256xf32>
    %cst_101 = arith.constant dense<0.000000e+00> : vector<8x256xf32>
    %263 = tpu.matmul %260, %259, %cst_101 {dimension_numbers = #tpu.dot_dimension_numbers<[1], [0], [0], [1], [0, 0, 1, 1], [], []>} : vector<8x64xf32>, vector<64x256xf32>, vector<8x256xf32> -> vector<8x256xf32>
    %264 = arith.addf %262, %263 : vector<8x256xf32>
    %265 = vector.extract_strided_slice %264 {offsets = [0, 0], sizes = [8, 192], strides = [1, 1]} : vector<8x256xf32> to vector<8x192xf32>
    %cst_102 = arith.constant 5.000000e-01 : f32
    %266 = vector.broadcast %cst_102 : f32 to vector<8x192xf32>
    %267 = arith.mulf %266, %265 : vector<8x192xf32>
    %268 = math.tanh %267 : vector<8x192xf32>
    %cst_103 = arith.constant 5.000000e-01 : f32
    %269 = vector.broadcast %cst_103 : f32 to vector<8x192xf32>
    %270 = arith.mulf %269, %268 : vector<8x192xf32>
    %cst_104 = arith.constant 5.000000e-01 : f32
    %271 = vector.broadcast %cst_104 : f32 to vector<8x192xf32>
    %272 = arith.addf %270, %271 : vector<8x192xf32>
    %273 = vector.extract_strided_slice %272 {offsets = [0, 0], sizes = [8, 64], strides = [1, 1]} : vector<8x192xf32> to vector<8x64xf32>
    %274 = vector.extract_strided_slice %272 {offsets = [0, 64], sizes = [8, 64], strides = [1, 1]} : vector<8x192xf32> to vector<8x64xf32>
    %275 = vector.extract_strided_slice %272 {offsets = [0, 128], sizes = [8, 64], strides = [1, 1]} : vector<8x192xf32> to vector<8x64xf32>
    %276 = vector.extract_strided_slice %264 {offsets = [0, 192], sizes = [8, 64], strides = [1, 1]} : vector<8x256xf32> to vector<8x64xf32>
    %277 = math.tanh %276 : vector<8x64xf32>
    %278 = arith.mulf %274, %261 : vector<8x64xf32>
    %279 = arith.mulf %273, %277 : vector<8x64xf32>
    %280 = arith.addf %278, %279 : vector<8x64xf32>
    %281 = math.tanh %280 : vector<8x64xf32>
    %282 = arith.mulf %275, %281 : vector<8x64xf32>
    %c8_105 = arith.constant 8 : index
    %c0_106 = arith.constant 0 : index
    %283 = vector.load %arg12[%c8_105, %c0_106] : memref<80x256xf32, #tpu.memory_space<vmem>>, vector<8x256xf32>
    %cst_107 = arith.constant dense<0.000000e+00> : vector<8x256xf32>
    %284 = tpu.matmul %282, %259, %cst_107 {dimension_numbers = #tpu.dot_dimension_numbers<[1], [0], [0], [1], [0, 0, 1, 1], [], []>} : vector<8x64xf32>, vector<64x256xf32>, vector<8x256xf32> -> vector<8x256xf32>
    %285 = arith.addf %283, %284 : vector<8x256xf32>
    %286 = vector.extract_strided_slice %285 {offsets = [0, 0], sizes = [8, 192], strides = [1, 1]} : vector<8x256xf32> to vector<8x192xf32>
    %cst_108 = arith.constant 5.000000e-01 : f32
    %287 = vector.broadcast %cst_108 : f32 to vector<8x192xf32>
    %288 = arith.mulf %287, %286 : vector<8x192xf32>
    %289 = math.tanh %288 : vector<8x192xf32>
    %cst_109 = arith.constant 5.000000e-01 : f32
    %290 = vector.broadcast %cst_109 : f32 to vector<8x192xf32>
    %291 = arith.mulf %290, %289 : vector<8x192xf32>
    %cst_110 = arith.constant 5.000000e-01 : f32
    %292 = vector.broadcast %cst_110 : f32 to vector<8x192xf32>
    %293 = arith.addf %291, %292 : vector<8x192xf32>
    %294 = vector.extract_strided_slice %293 {offsets = [0, 0], sizes = [8, 64], strides = [1, 1]} : vector<8x192xf32> to vector<8x64xf32>
    %295 = vector.extract_strided_slice %293 {offsets = [0, 64], sizes = [8, 64], strides = [1, 1]} : vector<8x192xf32> to vector<8x64xf32>
    %296 = vector.extract_strided_slice %293 {offsets = [0, 128], sizes = [8, 64], strides = [1, 1]} : vector<8x192xf32> to vector<8x64xf32>
    %297 = vector.extract_strided_slice %285 {offsets = [0, 192], sizes = [8, 64], strides = [1, 1]} : vector<8x256xf32> to vector<8x64xf32>
    %298 = math.tanh %297 : vector<8x64xf32>
    %299 = arith.mulf %295, %280 : vector<8x64xf32>
    %300 = arith.mulf %294, %298 : vector<8x64xf32>
    %301 = arith.addf %299, %300 : vector<8x64xf32>
    %302 = math.tanh %301 : vector<8x64xf32>
    %303 = arith.mulf %296, %302 : vector<8x64xf32>
    %c16_111 = arith.constant 16 : index
    %c0_112 = arith.constant 0 : index
    %304 = vector.load %arg12[%c16_111, %c0_112] : memref<80x256xf32, #tpu.memory_space<vmem>>, vector<8x256xf32>
    %cst_113 = arith.constant dense<0.000000e+00> : vector<8x256xf32>
    %305 = tpu.matmul %303, %259, %cst_113 {dimension_numbers = #tpu.dot_dimension_numbers<[1], [0], [0], [1], [0, 0, 1, 1], [], []>} : vector<8x64xf32>, vector<64x256xf32>, vector<8x256xf32> -> vector<8x256xf32>
    %306 = arith.addf %304, %305 : vector<8x256xf32>
    %307 = vector.extract_strided_slice %306 {offsets = [0, 0], sizes = [8, 192], strides = [1, 1]} : vector<8x256xf32> to vector<8x192xf32>
    %cst_114 = arith.constant 5.000000e-01 : f32
    %308 = vector.broadcast %cst_114 : f32 to vector<8x192xf32>
    %309 = arith.mulf %308, %307 : vector<8x192xf32>
    %310 = math.tanh %309 : vector<8x192xf32>
    %cst_115 = arith.constant 5.000000e-01 : f32
    %311 = vector.broadcast %cst_115 : f32 to vector<8x192xf32>
    %312 = arith.mulf %311, %310 : vector<8x192xf32>
    %cst_116 = arith.constant 5.000000e-01 : f32
    %313 = vector.broadcast %cst_116 : f32 to vector<8x192xf32>
    %314 = arith.addf %312, %313 : vector<8x192xf32>
    %315 = vector.extract_strided_slice %314 {offsets = [0, 0], sizes = [8, 64], strides = [1, 1]} : vector<8x192xf32> to vector<8x64xf32>
    %316 = vector.extract_strided_slice %314 {offsets = [0, 64], sizes = [8, 64], strides = [1, 1]} : vector<8x192xf32> to vector<8x64xf32>
    %317 = vector.extract_strided_slice %314 {offsets = [0, 128], sizes = [8, 64], strides = [1, 1]} : vector<8x192xf32> to vector<8x64xf32>
    %318 = vector.extract_strided_slice %306 {offsets = [0, 192], sizes = [8, 64], strides = [1, 1]} : vector<8x256xf32> to vector<8x64xf32>
    %319 = math.tanh %318 : vector<8x64xf32>
    %320 = arith.mulf %316, %301 : vector<8x64xf32>
    %321 = arith.mulf %315, %319 : vector<8x64xf32>
    %322 = arith.addf %320, %321 : vector<8x64xf32>
    %323 = math.tanh %322 : vector<8x64xf32>
    %324 = arith.mulf %317, %323 : vector<8x64xf32>
    %c24_117 = arith.constant 24 : index
    %c0_118 = arith.constant 0 : index
    %325 = vector.load %arg12[%c24_117, %c0_118] : memref<80x256xf32, #tpu.memory_space<vmem>>, vector<8x256xf32>
    %cst_119 = arith.constant dense<0.000000e+00> : vector<8x256xf32>
    %326 = tpu.matmul %324, %259, %cst_119 {dimension_numbers = #tpu.dot_dimension_numbers<[1], [0], [0], [1], [0, 0, 1, 1], [], []>} : vector<8x64xf32>, vector<64x256xf32>, vector<8x256xf32> -> vector<8x256xf32>
    %327 = arith.addf %325, %326 : vector<8x256xf32>
    %328 = vector.extract_strided_slice %327 {offsets = [0, 0], sizes = [8, 192], strides = [1, 1]} : vector<8x256xf32> to vector<8x192xf32>
    %cst_120 = arith.constant 5.000000e-01 : f32
    %329 = vector.broadcast %cst_120 : f32 to vector<8x192xf32>
    %330 = arith.mulf %329, %328 : vector<8x192xf32>
    %331 = math.tanh %330 : vector<8x192xf32>
    %cst_121 = arith.constant 5.000000e-01 : f32
    %332 = vector.broadcast %cst_121 : f32 to vector<8x192xf32>
    %333 = arith.mulf %332, %331 : vector<8x192xf32>
    %cst_122 = arith.constant 5.000000e-01 : f32
    %334 = vector.broadcast %cst_122 : f32 to vector<8x192xf32>
    %335 = arith.addf %333, %334 : vector<8x192xf32>
    %336 = vector.extract_strided_slice %335 {offsets = [0, 0], sizes = [8, 64], strides = [1, 1]} : vector<8x192xf32> to vector<8x64xf32>
    %337 = vector.extract_strided_slice %335 {offsets = [0, 64], sizes = [8, 64], strides = [1, 1]} : vector<8x192xf32> to vector<8x64xf32>
    %338 = vector.extract_strided_slice %335 {offsets = [0, 128], sizes = [8, 64], strides = [1, 1]} : vector<8x192xf32> to vector<8x64xf32>
    %339 = vector.extract_strided_slice %327 {offsets = [0, 192], sizes = [8, 64], strides = [1, 1]} : vector<8x256xf32> to vector<8x64xf32>
    %340 = math.tanh %339 : vector<8x64xf32>
    %341 = arith.mulf %337, %322 : vector<8x64xf32>
    %342 = arith.mulf %336, %340 : vector<8x64xf32>
    %343 = arith.addf %341, %342 : vector<8x64xf32>
    %344 = math.tanh %343 : vector<8x64xf32>
    %345 = arith.mulf %338, %344 : vector<8x64xf32>
    %c32_123 = arith.constant 32 : index
    %c0_124 = arith.constant 0 : index
    %346 = vector.load %arg12[%c32_123, %c0_124] : memref<80x256xf32, #tpu.memory_space<vmem>>, vector<8x256xf32>
    %cst_125 = arith.constant dense<0.000000e+00> : vector<8x256xf32>
    %347 = tpu.matmul %345, %259, %cst_125 {dimension_numbers = #tpu.dot_dimension_numbers<[1], [0], [0], [1], [0, 0, 1, 1], [], []>} : vector<8x64xf32>, vector<64x256xf32>, vector<8x256xf32> -> vector<8x256xf32>
    %348 = arith.addf %346, %347 : vector<8x256xf32>
    %349 = vector.extract_strided_slice %348 {offsets = [0, 0], sizes = [8, 192], strides = [1, 1]} : vector<8x256xf32> to vector<8x192xf32>
    %cst_126 = arith.constant 5.000000e-01 : f32
    %350 = vector.broadcast %cst_126 : f32 to vector<8x192xf32>
    %351 = arith.mulf %350, %349 : vector<8x192xf32>
    %352 = math.tanh %351 : vector<8x192xf32>
    %cst_127 = arith.constant 5.000000e-01 : f32
    %353 = vector.broadcast %cst_127 : f32 to vector<8x192xf32>
    %354 = arith.mulf %353, %352 : vector<8x192xf32>
    %cst_128 = arith.constant 5.000000e-01 : f32
    %355 = vector.broadcast %cst_128 : f32 to vector<8x192xf32>
    %356 = arith.addf %354, %355 : vector<8x192xf32>
    %357 = vector.extract_strided_slice %356 {offsets = [0, 0], sizes = [8, 64], strides = [1, 1]} : vector<8x192xf32> to vector<8x64xf32>
    %358 = vector.extract_strided_slice %356 {offsets = [0, 64], sizes = [8, 64], strides = [1, 1]} : vector<8x192xf32> to vector<8x64xf32>
    %359 = vector.extract_strided_slice %356 {offsets = [0, 128], sizes = [8, 64], strides = [1, 1]} : vector<8x192xf32> to vector<8x64xf32>
    %360 = vector.extract_strided_slice %348 {offsets = [0, 192], sizes = [8, 64], strides = [1, 1]} : vector<8x256xf32> to vector<8x64xf32>
    %361 = math.tanh %360 : vector<8x64xf32>
    %362 = arith.mulf %358, %343 : vector<8x64xf32>
    %363 = arith.mulf %357, %361 : vector<8x64xf32>
    %364 = arith.addf %362, %363 : vector<8x64xf32>
    %365 = math.tanh %364 : vector<8x64xf32>
    %366 = arith.mulf %359, %365 : vector<8x64xf32>
    %c40_129 = arith.constant 40 : index
    %c0_130 = arith.constant 0 : index
    %367 = vector.load %arg12[%c40_129, %c0_130] : memref<80x256xf32, #tpu.memory_space<vmem>>, vector<8x256xf32>
    %cst_131 = arith.constant dense<0.000000e+00> : vector<8x256xf32>
    %368 = tpu.matmul %366, %259, %cst_131 {dimension_numbers = #tpu.dot_dimension_numbers<[1], [0], [0], [1], [0, 0, 1, 1], [], []>} : vector<8x64xf32>, vector<64x256xf32>, vector<8x256xf32> -> vector<8x256xf32>
    %369 = arith.addf %367, %368 : vector<8x256xf32>
    %370 = vector.extract_strided_slice %369 {offsets = [0, 0], sizes = [8, 192], strides = [1, 1]} : vector<8x256xf32> to vector<8x192xf32>
    %cst_132 = arith.constant 5.000000e-01 : f32
    %371 = vector.broadcast %cst_132 : f32 to vector<8x192xf32>
    %372 = arith.mulf %371, %370 : vector<8x192xf32>
    %373 = math.tanh %372 : vector<8x192xf32>
    %cst_133 = arith.constant 5.000000e-01 : f32
    %374 = vector.broadcast %cst_133 : f32 to vector<8x192xf32>
    %375 = arith.mulf %374, %373 : vector<8x192xf32>
    %cst_134 = arith.constant 5.000000e-01 : f32
    %376 = vector.broadcast %cst_134 : f32 to vector<8x192xf32>
    %377 = arith.addf %375, %376 : vector<8x192xf32>
    %378 = vector.extract_strided_slice %377 {offsets = [0, 0], sizes = [8, 64], strides = [1, 1]} : vector<8x192xf32> to vector<8x64xf32>
    %379 = vector.extract_strided_slice %377 {offsets = [0, 64], sizes = [8, 64], strides = [1, 1]} : vector<8x192xf32> to vector<8x64xf32>
    %380 = vector.extract_strided_slice %377 {offsets = [0, 128], sizes = [8, 64], strides = [1, 1]} : vector<8x192xf32> to vector<8x64xf32>
    %381 = vector.extract_strided_slice %369 {offsets = [0, 192], sizes = [8, 64], strides = [1, 1]} : vector<8x256xf32> to vector<8x64xf32>
    %382 = math.tanh %381 : vector<8x64xf32>
    %383 = arith.mulf %379, %364 : vector<8x64xf32>
    %384 = arith.mulf %378, %382 : vector<8x64xf32>
    %385 = arith.addf %383, %384 : vector<8x64xf32>
    %386 = math.tanh %385 : vector<8x64xf32>
    %387 = arith.mulf %380, %386 : vector<8x64xf32>
    %c48_135 = arith.constant 48 : index
    %c0_136 = arith.constant 0 : index
    %388 = vector.load %arg12[%c48_135, %c0_136] : memref<80x256xf32, #tpu.memory_space<vmem>>, vector<8x256xf32>
    %cst_137 = arith.constant dense<0.000000e+00> : vector<8x256xf32>
    %389 = tpu.matmul %387, %259, %cst_137 {dimension_numbers = #tpu.dot_dimension_numbers<[1], [0], [0], [1], [0, 0, 1, 1], [], []>} : vector<8x64xf32>, vector<64x256xf32>, vector<8x256xf32> -> vector<8x256xf32>
    %390 = arith.addf %388, %389 : vector<8x256xf32>
    %391 = vector.extract_strided_slice %390 {offsets = [0, 0], sizes = [8, 192], strides = [1, 1]} : vector<8x256xf32> to vector<8x192xf32>
    %cst_138 = arith.constant 5.000000e-01 : f32
    %392 = vector.broadcast %cst_138 : f32 to vector<8x192xf32>
    %393 = arith.mulf %392, %391 : vector<8x192xf32>
    %394 = math.tanh %393 : vector<8x192xf32>
    %cst_139 = arith.constant 5.000000e-01 : f32
    %395 = vector.broadcast %cst_139 : f32 to vector<8x192xf32>
    %396 = arith.mulf %395, %394 : vector<8x192xf32>
    %cst_140 = arith.constant 5.000000e-01 : f32
    %397 = vector.broadcast %cst_140 : f32 to vector<8x192xf32>
    %398 = arith.addf %396, %397 : vector<8x192xf32>
    %399 = vector.extract_strided_slice %398 {offsets = [0, 0], sizes = [8, 64], strides = [1, 1]} : vector<8x192xf32> to vector<8x64xf32>
    %400 = vector.extract_strided_slice %398 {offsets = [0, 64], sizes = [8, 64], strides = [1, 1]} : vector<8x192xf32> to vector<8x64xf32>
    %401 = vector.extract_strided_slice %398 {offsets = [0, 128], sizes = [8, 64], strides = [1, 1]} : vector<8x192xf32> to vector<8x64xf32>
    %402 = vector.extract_strided_slice %390 {offsets = [0, 192], sizes = [8, 64], strides = [1, 1]} : vector<8x256xf32> to vector<8x64xf32>
    %403 = math.tanh %402 : vector<8x64xf32>
    %404 = arith.mulf %400, %385 : vector<8x64xf32>
    %405 = arith.mulf %399, %403 : vector<8x64xf32>
    %406 = arith.addf %404, %405 : vector<8x64xf32>
    %407 = math.tanh %406 : vector<8x64xf32>
    %408 = arith.mulf %401, %407 : vector<8x64xf32>
    %c56_141 = arith.constant 56 : index
    %c0_142 = arith.constant 0 : index
    %409 = vector.load %arg12[%c56_141, %c0_142] : memref<80x256xf32, #tpu.memory_space<vmem>>, vector<8x256xf32>
    %cst_143 = arith.constant dense<0.000000e+00> : vector<8x256xf32>
    %410 = tpu.matmul %408, %259, %cst_143 {dimension_numbers = #tpu.dot_dimension_numbers<[1], [0], [0], [1], [0, 0, 1, 1], [], []>} : vector<8x64xf32>, vector<64x256xf32>, vector<8x256xf32> -> vector<8x256xf32>
    %411 = arith.addf %409, %410 : vector<8x256xf32>
    %412 = vector.extract_strided_slice %411 {offsets = [0, 0], sizes = [8, 192], strides = [1, 1]} : vector<8x256xf32> to vector<8x192xf32>
    %cst_144 = arith.constant 5.000000e-01 : f32
    %413 = vector.broadcast %cst_144 : f32 to vector<8x192xf32>
    %414 = arith.mulf %413, %412 : vector<8x192xf32>
    %415 = math.tanh %414 : vector<8x192xf32>
    %cst_145 = arith.constant 5.000000e-01 : f32
    %416 = vector.broadcast %cst_145 : f32 to vector<8x192xf32>
    %417 = arith.mulf %416, %415 : vector<8x192xf32>
    %cst_146 = arith.constant 5.000000e-01 : f32
    %418 = vector.broadcast %cst_146 : f32 to vector<8x192xf32>
    %419 = arith.addf %417, %418 : vector<8x192xf32>
    %420 = vector.extract_strided_slice %419 {offsets = [0, 0], sizes = [8, 64], strides = [1, 1]} : vector<8x192xf32> to vector<8x64xf32>
    %421 = vector.extract_strided_slice %419 {offsets = [0, 64], sizes = [8, 64], strides = [1, 1]} : vector<8x192xf32> to vector<8x64xf32>
    %422 = vector.extract_strided_slice %419 {offsets = [0, 128], sizes = [8, 64], strides = [1, 1]} : vector<8x192xf32> to vector<8x64xf32>
    %423 = vector.extract_strided_slice %411 {offsets = [0, 192], sizes = [8, 64], strides = [1, 1]} : vector<8x256xf32> to vector<8x64xf32>
    %424 = math.tanh %423 : vector<8x64xf32>
    %425 = arith.mulf %421, %406 : vector<8x64xf32>
    %426 = arith.mulf %420, %424 : vector<8x64xf32>
    %427 = arith.addf %425, %426 : vector<8x64xf32>
    %428 = math.tanh %427 : vector<8x64xf32>
    %429 = arith.mulf %422, %428 : vector<8x64xf32>
    %c64_147 = arith.constant 64 : index
    %c0_148 = arith.constant 0 : index
    %430 = vector.load %arg12[%c64_147, %c0_148] : memref<80x256xf32, #tpu.memory_space<vmem>>, vector<8x256xf32>
    %cst_149 = arith.constant dense<0.000000e+00> : vector<8x256xf32>
    %431 = tpu.matmul %429, %259, %cst_149 {dimension_numbers = #tpu.dot_dimension_numbers<[1], [0], [0], [1], [0, 0, 1, 1], [], []>} : vector<8x64xf32>, vector<64x256xf32>, vector<8x256xf32> -> vector<8x256xf32>
    %432 = arith.addf %430, %431 : vector<8x256xf32>
    %433 = vector.extract_strided_slice %432 {offsets = [0, 0], sizes = [8, 192], strides = [1, 1]} : vector<8x256xf32> to vector<8x192xf32>
    %cst_150 = arith.constant 5.000000e-01 : f32
    %434 = vector.broadcast %cst_150 : f32 to vector<8x192xf32>
    %435 = arith.mulf %434, %433 : vector<8x192xf32>
    %436 = math.tanh %435 : vector<8x192xf32>
    %cst_151 = arith.constant 5.000000e-01 : f32
    %437 = vector.broadcast %cst_151 : f32 to vector<8x192xf32>
    %438 = arith.mulf %437, %436 : vector<8x192xf32>
    %cst_152 = arith.constant 5.000000e-01 : f32
    %439 = vector.broadcast %cst_152 : f32 to vector<8x192xf32>
    %440 = arith.addf %438, %439 : vector<8x192xf32>
    %441 = vector.extract_strided_slice %440 {offsets = [0, 0], sizes = [8, 64], strides = [1, 1]} : vector<8x192xf32> to vector<8x64xf32>
    %442 = vector.extract_strided_slice %440 {offsets = [0, 64], sizes = [8, 64], strides = [1, 1]} : vector<8x192xf32> to vector<8x64xf32>
    %443 = vector.extract_strided_slice %440 {offsets = [0, 128], sizes = [8, 64], strides = [1, 1]} : vector<8x192xf32> to vector<8x64xf32>
    %444 = vector.extract_strided_slice %432 {offsets = [0, 192], sizes = [8, 64], strides = [1, 1]} : vector<8x256xf32> to vector<8x64xf32>
    %445 = math.tanh %444 : vector<8x64xf32>
    %446 = arith.mulf %442, %427 : vector<8x64xf32>
    %447 = arith.mulf %441, %445 : vector<8x64xf32>
    %448 = arith.addf %446, %447 : vector<8x64xf32>
    %449 = math.tanh %448 : vector<8x64xf32>
    %450 = arith.mulf %443, %449 : vector<8x64xf32>
    %c72_153 = arith.constant 72 : index
    %c0_154 = arith.constant 0 : index
    %451 = vector.load %arg12[%c72_153, %c0_154] : memref<80x256xf32, #tpu.memory_space<vmem>>, vector<8x256xf32>
    %cst_155 = arith.constant dense<0.000000e+00> : vector<8x256xf32>
    %452 = tpu.matmul %450, %259, %cst_155 {dimension_numbers = #tpu.dot_dimension_numbers<[1], [0], [0], [1], [0, 0, 1, 1], [], []>} : vector<8x64xf32>, vector<64x256xf32>, vector<8x256xf32> -> vector<8x256xf32>
    %453 = arith.addf %451, %452 : vector<8x256xf32>
    %454 = vector.extract_strided_slice %453 {offsets = [0, 0], sizes = [8, 192], strides = [1, 1]} : vector<8x256xf32> to vector<8x192xf32>
    %cst_156 = arith.constant 5.000000e-01 : f32
    %455 = vector.broadcast %cst_156 : f32 to vector<8x192xf32>
    %456 = arith.mulf %455, %454 : vector<8x192xf32>
    %457 = math.tanh %456 : vector<8x192xf32>
    %cst_157 = arith.constant 5.000000e-01 : f32
    %458 = vector.broadcast %cst_157 : f32 to vector<8x192xf32>
    %459 = arith.mulf %458, %457 : vector<8x192xf32>
    %cst_158 = arith.constant 5.000000e-01 : f32
    %460 = vector.broadcast %cst_158 : f32 to vector<8x192xf32>
    %461 = arith.addf %459, %460 : vector<8x192xf32>
    %462 = vector.extract_strided_slice %461 {offsets = [0, 0], sizes = [8, 64], strides = [1, 1]} : vector<8x192xf32> to vector<8x64xf32>
    %463 = vector.extract_strided_slice %461 {offsets = [0, 64], sizes = [8, 64], strides = [1, 1]} : vector<8x192xf32> to vector<8x64xf32>
    %464 = vector.extract_strided_slice %461 {offsets = [0, 128], sizes = [8, 64], strides = [1, 1]} : vector<8x192xf32> to vector<8x64xf32>
    %465 = vector.extract_strided_slice %453 {offsets = [0, 192], sizes = [8, 64], strides = [1, 1]} : vector<8x256xf32> to vector<8x64xf32>
    %466 = math.tanh %465 : vector<8x64xf32>
    %467 = arith.mulf %463, %448 : vector<8x64xf32>
    %468 = arith.mulf %462, %466 : vector<8x64xf32>
    %469 = arith.addf %467, %468 : vector<8x64xf32>
    %470 = math.tanh %469 : vector<8x64xf32>
    %471 = arith.mulf %464, %470 : vector<8x64xf32>
    %cst_159 = arith.constant dense<0.000000e+00> : vector<8xf32>
    %472 = vector.multi_reduction <add>, %471, %cst_159 [1] : vector<8x64xf32> to vector<8xf32>
    %473 = vector.shape_cast %472 : vector<8xf32> to vector<8x1xf32>
    %cst_160 = arith.constant 6.400000e+01 : f32
    %474 = vector.broadcast %cst_160 : f32 to vector<8x1xf32>
    %475 = arith.divf %473, %474 : vector<8x1xf32>
    %476 = vector.broadcast %475 : vector<8x1xf32> to vector<8x64xf32>
    %477 = arith.subf %471, %476 : vector<8x64xf32>
    %478 = arith.mulf %477, %477 : vector<8x64xf32>
    %cst_161 = arith.constant dense<0.000000e+00> : vector<8xf32>
    %479 = vector.multi_reduction <add>, %478, %cst_161 [1] : vector<8x64xf32> to vector<8xf32>
    %480 = vector.shape_cast %479 : vector<8xf32> to vector<8x1xf32>
    %cst_162 = arith.constant 6.400000e+01 : f32
    %481 = vector.broadcast %cst_162 : f32 to vector<8x1xf32>
    %482 = arith.divf %480, %481 : vector<8x1xf32>
    %cst_163 = arith.constant 9.99999974E-6 : f32
    %483 = vector.broadcast %cst_163 : f32 to vector<8x1xf32>
    %484 = arith.addf %482, %483 : vector<8x1xf32>
    %485 = math.rsqrt %484 : vector<8x1xf32>
    %486 = vector.broadcast %485 : vector<8x1xf32> to vector<8x64xf32>
    %487 = arith.mulf %477, %486 : vector<8x64xf32>
    %c0_164 = arith.constant 0 : index
    %c0_165 = arith.constant 0 : index
    %488 = vector.load %arg8[%c0_164, %c0_165] : memref<1x64xf32, #tpu.memory_space<vmem>>, vector<1x64xf32>
    %489 = vector.broadcast %488 : vector<1x64xf32> to vector<8x64xf32>
    %490 = arith.mulf %487, %489 : vector<8x64xf32>
    %c0_166 = arith.constant 0 : index
    %c0_167 = arith.constant 0 : index
    %491 = vector.load %arg9[%c0_166, %c0_167] : memref<1x64xf32, #tpu.memory_space<vmem>>, vector<1x64xf32>
    %492 = vector.broadcast %491 : vector<1x64xf32> to vector<8x64xf32>
    %493 = arith.addf %490, %492 : vector<8x64xf32>
    %c0_168 = arith.constant 0 : index
    %c0_169 = arith.constant 0 : index
    %494 = vector.load %arg10[%c0_168, %c0_169] : memref<8x64xf32, #tpu.memory_space<vmem>>, vector<8x64xf32>
    tpu.vector_store %arg10[%c0_168, %c0_169], %493 {strides = array<i32>} : memref<8x64xf32, #tpu.memory_space<vmem>>, vector<8x64xf32>,
    return
  }
  func.func @transform_0(%arg0: i32) -> (i32, i32) {
    %c0_i32 = arith.constant 0 : i32
    %c0_i32_0 = arith.constant 0 : i32
    return %arg0, %c0_i32 : i32, i32
  }
  func.func @transform_1(%arg0: i32) -> (i32, i32) {
    %c0_i32 = arith.constant 0 : i32
    %c0_i32_0 = arith.constant 0 : i32
    %c0_i32_1 = arith.constant 0 : i32
    return %c0_i32, %c0_i32_0 : i32, i32
  }
  func.func @transform_2(%arg0: i32) -> (i32, i32) {
    %c0_i32 = arith.constant 0 : i32
    %c0_i32_0 = arith.constant 0 : i32
    %c0_i32_1 = arith.constant 0 : i32
    return %c0_i32, %c0_i32_0 : i32, i32
  }
  func.func @transform_3(%arg0: i32) -> (i32, i32) {
    %c0_i32 = arith.constant 0 : i32
    %c0_i32_0 = arith.constant 0 : i32
    %c0_i32_1 = arith.constant 0 : i32
    return %c0_i32, %c0_i32_0 : i32, i32
  }
  func.func @transform_4(%arg0: i32) -> (i32, i32) {
    %c0_i32 = arith.constant 0 : i32
    %c0_i32_0 = arith.constant 0 : i32
    %c0_i32_1 = arith.constant 0 : i32
    return %c0_i32, %c0_i32_0 : i32, i32
  }
  func.func @transform_5(%arg0: i32) -> (i32, i32) {
    %c0_i32 = arith.constant 0 : i32
    %c0_i32_0 = arith.constant 0 : i32
    %c0_i32_1 = arith.constant 0 : i32
    return %c0_i32, %c0_i32_0 : i32, i32
  }
  func.func @transform_6(%arg0: i32) -> (i32, i32) {
    %c0_i32 = arith.constant 0 : i32
    %c0_i32_0 = arith.constant 0 : i32
    %c0_i32_1 = arith.constant 0 : i32
    return %c0_i32, %c0_i32_0 : i32, i32
  }
  func.func @transform_7(%arg0: i32) -> (i32, i32) {
    %c0_i32 = arith.constant 0 : i32
    %c0_i32_0 = arith.constant 0 : i32
    %c0_i32_1 = arith.constant 0 : i32
    return %c0_i32, %c0_i32_0 : i32, i32
  }
  func.func @transform_8(%arg0: i32) -> (i32, i32) {
    %c0_i32 = arith.constant 0 : i32
    %c0_i32_0 = arith.constant 0 : i32
    %c0_i32_1 = arith.constant 0 : i32
    return %c0_i32, %c0_i32_0 : i32, i32
  }
  func.func @transform_9(%arg0: i32) -> (i32, i32) {
    %c0_i32 = arith.constant 0 : i32
    %c0_i32_0 = arith.constant 0 : i32
    return %arg0, %c0_i32 : i32, i32
  }
}

</mosaic_0001>

<bundles_post_ra>
// kernel: tpu_custom_call.1
= control target key start
LH: loop header
LB: loop body
LE: loop exit
PB: predicated region body
PF: predicated region fallthrough
CT: control target
= control target key end

     0   :  { %14 = vsyncpa [#allocation5], 0  ;;  %s2952_s0 = inlined_call_operand.hbm [shape: f32[8,600], index: 0, kind: input, shape index: {}]   ;;  %s2953_s1 = inlined_call_operand.hbm [shape: f32[10,60], index: 1, kind: input, shape index: {}]   ;;  %s2954_s2 = inlined_call_operand.vmem [shape: f32[1,60], index: 2, kind: input, shape index: {}]   ;;  %s2955_s3 = inlined_call_operand.vmem [shape: f32[1,60], index: 3, kind: input, shape index: {}]   ;;  %s2956_s4 = inlined_call_operand.hbm [shape: f32[60,256], index: 4, kind: input, shape index: {}]   ;;  %s2957_s5 = inlined_call_operand.hbm [shape: f32[64,256], index: 5, kind: input, shape index: {}]   ;;  %s2958_s6 = inlined_call_operand.vmem [shape: f32[1,256], index: 6, kind: input, shape index: {}]   ;;  %s2959_s7 = inlined_call_operand.vmem [shape: f32[1,64], index: 7, kind: input, shape index: {}]   ;;  %s2960_s8 = inlined_call_operand.vmem [shape: f32[1,64], index: 8, kind: input, shape index: {}]   ;;  %s2961_s9 = inlined_call_operand.hbm [shape: f32[8,64], index: 9, kind: output, shape index: {}]  }
   0x1   :  { %15 = vsyncpa [#allocation8], 0 }
   0x2   :  { %16 = vsyncpa [#allocation11], 0 }
   0x3   :  { %17 = vsyncpa [#allocation6], 0  ;;  %s2223_s30 = smov [#allocation7]  }
   0x4   :  { %s33_s10 = sshll.u32 %s2223_s30, 4  ;;  %s34_s10 = int_to_ptr.vmem [resolvable:$true] %s33_s10 }
   0x5   :  { %s2123_s11 = scalar_lea.vmem %s34_s10, 256  ;;  %p2128_p1 = scmp.lt.s32.totalorder %s34_s10, %s34_s10 }
   0x6   :  { %p2124_p0 = scmp.ne.s32.totalorder %s34_s10, %s2123_s11  ;;  %p2129_p2 = scmp.lt.s32.totalorder %s2123_s11, %s2123_s11 }
   0x8   :  { %p2130_p3 = por %p2129_p2, %p2128_p1 }
   0xa   :  { %p2131_p4 = pnand %p2130_p3, %p2124_p0 }
   0xc   :  { %2134 = shalt.err (!%p2131_p4)
}
   0xd   :  { %s2224_s12 = smov 128   ;;  %s2225_s13 = smov 8  }
   0xe   :  { %39 = dma.hbm_to_vmem [thread:$0]  %s2953_s1, 256, %s34_s10, [#allocation8], %s2224_s12, %s2224_s12, %s2225_s13  }
   0xf   :  { %s2226_s16 = smov [#allocation4]   ;;  %s2227_s18 = smov [#allocation9]  }
  0x10   :  { %s24_s17 = sshll.u32 %s2226_s16, 4  ;;  %s49_s19 = sshll.u32 %s2227_s18, 4  ;;  %s25_s17 = int_to_ptr.vmem [resolvable:$true] %s24_s17  ;;  %s50_s19 = int_to_ptr.vmem [resolvable:$true] %s49_s19 }
  0x11   :  { %s2143_s20 = scalar_lea.vmem %s25_s17, 640  ;;  %p2148_p6 = scmp.lt.s32.totalorder %s25_s17, %s25_s17 }
  0x12   :  { %p2144_p5 = scmp.ne.s32.totalorder %s25_s17, %s2143_s20  ;;  %p2149_p7 = scmp.lt.s32.totalorder %s2143_s20, %s2143_s20 }
  0x14   :  { %p2150_p8 = por %p2149_p7, %p2148_p6 }
  0x16   :  { %p2151_p9 = pnand %p2150_p8, %p2144_p5 }
  0x18   :  { %2154 = shalt.err (!%p2151_p9)
}
  0x19   :  { %27 = dma.hbm_to_vmem [thread:$0]  %s2952_s0, 640, %s25_s17, [#allocation5]  }
  0x1a   :  { %s2163_s23 = scalar_lea.vmem %s50_s19, 2048  ;;  %p2168_p11 = scmp.lt.s32.totalorder %s50_s19, %s50_s19 }
  0x1b   :  { %p2164_p10 = scmp.ne.s32.totalorder %s50_s19, %s2163_s23  ;;  %p2169_p12 = scmp.lt.s32.totalorder %s2163_s23, %s2163_s23 }
  0x1d   :  { %p2170_p13 = por %p2169_p12, %p2168_p11 }
  0x1f   :  { %p2171_p0 = pnand %p2170_p13, %p2164_p10 }
  0x21   :  { %2174 = shalt.err (!%p2171_p0)
}
  0x22   :  { %s2228_s1 = smov 256   ;;  %s2229_s24 = smov 16  }
  0x23   :  { %55 = dma.hbm_to_vmem [thread:$0]  %s2956_s4, 2048, %s50_s19, [#allocation8], %s2228_s1, %s2228_s1, %s2229_s24  }
  0x24   :  { %s2230_s27 = smov [#allocation10]  }
  0x25   :  { %s61_s28 = sshll.u32 %s2230_s27, 4  ;;  %s62_s28 = int_to_ptr.vmem [resolvable:$true] %s61_s28 }
  0x26   :  { %s2183_s29 = scalar_lea.vmem %s62_s28, 2048  ;;  %p2188_p2 = scmp.lt.s32.totalorder %s62_s28, %s62_s28 }
  0x27   :  { %p2184_p1 = scmp.ne.s32.totalorder %s62_s28, %s2183_s29  ;;  %p2189_p3 = scmp.lt.s32.totalorder %s2183_s29, %s2183_s29 }
  0x29   :  { %p2190_p4 = por %p2189_p3, %p2188_p2 }
  0x2b   :  { %p2191_p5 = pnand %p2190_p4, %p2184_p1 }
  0x2d   :  { %2194 = shalt.err (!%p2191_p5)
}
  0x2e   :  { %67 = dma.hbm_to_vmem [thread:$0]  %s2957_s5, 2048, %s62_s28, [#allocation11], %s2228_s1, %s2228_s1, %s2229_s24  }
  0x2f   :  { %2215 = dma.done.wait [#allocation5], 640  }
  0x30   :  { %2216 = vsyncadd [#allocation5], 4294966656 }
  0x31   :  { %2217 = dma.done.wait [#allocation8], 2304  }
  0x32   :  { %2218 = vsyncadd [#allocation8], 4294964992 }
  0x33   :  { %2219 = dma.done.wait [#allocation11], 2048  }
  0x34   :  { %2220 = vsyncadd [#allocation11], 4294965248  ;;  %v1938_v0 = vld [vmem:[#allocation7 + $0x1] ss:$0 sm:$0xff]  ;;  %v2315_v1 = vld [vmem:[#allocation4] sm:$0xff]  ;;  %vm95_vm0 = vcmask 490496   ;;  %v638_v57 = vlaneseq }
  0x35   :  { %v1935_v2 = vld [vmem:[#allocation7] ss:$0 sm:$0xff]  ;;  %s2231_s4 = smov 60   ;;  %s2232_s5 = smov 68   ;;  %v635_v12 = vld [vmem:[#allocation9 + $0x78] sm:$0xf] }
  0x36   :  { %132 = vrot.lane.b32.xlu1 %v1938_v0, %s2231_s4  ;;  %v94_v3 = vadd.f32 %v1935_v2, %v2315_v1  ;;  %vm678_vm1 = vcmask 1043456   ;;  %v2330_v13 = vld [vmem:[#allocation10 + $0x78] sm:$0xff]  ;;  %v634_v14 = vld [vmem:[#allocation9 + $0x70] sm:$0xf]  ;;  %v633_v16 = vld [vmem:[#allocation9 + $0x68] sm:$0xff]  ;;  %v2233_v44 = vmov 0.0  }
  0x37   :  { %1947 = vmatprep.subr.msk.mxu0 %vm678_vm1, %v635_v12  ;;  %868 = vmatprep.subr.mxu1 %v2330_v13  ;;  %v2333_v15 = vld [vmem:[#allocation10 + $0x70] sm:$0xff]  ;;  %v2336_v17 = vld [vmem:[#allocation10 + $0x68] sm:$0xff]  ;;  %v632_v18 = vld [vmem:[#allocation9 + $0x60] sm:$0xff]  ;;  %v639_v58 = vshrl.u32 %v638_v57, 7  ;;  %s2235_s15 = smov 120   ;;  %vm848_vm2 = vcmask 523264  }
  0x38   :  { %v96_v4 = vsel %vm95_vm0, %v94_v3, 0.0  ;;  %1948 = vmatpush1.msk.msra.mxu0 %vm678_vm1, %v634_v14  ;;  %869 = vmatpush1.msra.mxu1 %v2333_v15  ;;  %v2339_v19 = vld [vmem:[#allocation10 + $0x60] sm:$0xff]  ;;  %v631_v20 = vld [vmem:[#allocation9 + $0x58] sm:$0xff]  ;;  %v630_v22 = vld [vmem:[#allocation9 + $0x50] sm:$0xff]  ;;  %vm189_vm3 = vcmask 64512   ;;  %s2236_s16 = smov 52  }
  0x39   :  { %97 = vadd.xlane.f32.xlu0 %v96_v4  ;;  %703 = vmatprep.subr.mxu0 %v633_v16  ;;  %v2342_v21 = vld [vmem:[#allocation10 + $0x58] sm:$0xff]  ;;  %v2345_v23 = vld [vmem:[#allocation10 + $0x50] sm:$0xff]  ;;  %v629_v24 = vld [vmem:[#allocation9 + $0x48] sm:$0xff]  ;;  %v640_v60 = vsub.s32 0, %v639_v58  ;;  %s2237_s17 = smov 44   ;;  %s2238_s18 = smov 36  }
  0x3a   :  { %870 = vmatprep.subr.mxu1 %v2336_v17  ;;  %704 = vmatpush1.msra.mxu0 %v632_v18  ;;  %v2348_v25 = vld [vmem:[#allocation10 + $0x48] sm:$0xff]  ;;  %v628_v26 = vld [vmem:[#allocation9 + $0x40] sm:$0xff]  ;;  %v627_v28 = vld [vmem:[#allocation9 + $0x38] sm:$0xff]  ;;  %s2239_s19 = smov 28   ;;  %s2240_s20 = smov 112   ;;  %vm299_vm4 = vcmask 130048  }
  0x3b   :  { %871 = vmatpush1.msra.mxu1 %v2339_v19  ;;  %705 = vmatprep.subr.mxu0 %v631_v20  ;;  %v2351_v27 = vld [vmem:[#allocation10 + $0x40] sm:$0xff]  ;;  %v2354_v29 = vld [vmem:[#allocation10 + $0x38] sm:$0xff]  ;;  %v626_v30 = vld [vmem:[#allocation9 + $0x30] sm:$0xff]  ;;  %s2241_s21 = smov 104   ;;  %s2242_s22 = smov 96   ;;  %vm409_vm5 = vcmask 195584  }
  0x3c   :  { %872 = vmatprep.subr.mxu1 %v2342_v21  ;;  %706 = vmatpush1.msra.mxu0 %v630_v22  ;;  %v2357_v31 = vld [vmem:[#allocation10 + $0x30] sm:$0xff]  ;;  %v625_v32 = vld [vmem:[#allocation9 + $0x28] sm:$0xff]  ;;  %v624_v34 = vld [vmem:[#allocation9 + $0x20] sm:$0xff]  ;;  %s2244_s23 = smov 24   ;;  %s2245_s1 = smov 84   ;;  %vm519_vm6 = vcmask 261120  }
  0x3d   :  { %873 = vmatpush1.msra.mxu1 %v2345_v23  ;;  %707 = vmatprep.subr.mxu0 %v629_v24  ;;  %v2360_v33 = vld [vmem:[#allocation10 + $0x28] sm:$0xff]  ;;  %v2362_v35 = vld [vmem:[#allocation10 + $0x20] sm:$0xff]  ;;  %v623_v36 = vld [vmem:[#allocation9 + $0x18] sm:$0xff]  ;;  %s2246_s25 = smov 92   ;;  %s2247_s26 = smov 32  }
  0x3e   :  { %874 = vmatprep.subr.mxu1 %v2348_v25  ;;  %708 = vmatpush1.msra.mxu0 %v628_v26  ;;  %v2365_v37 = vld [vmem:[#allocation10 + $0x18] sm:$0xff]  ;;  %v622_v38 = vld [vmem:[#allocation9 + $0x10] sm:$0xff]  ;;  %v621_v40 = vld [vmem:[#allocation9 + $0x8] sm:$0xff]  ;;  %s2248_s27 = smov 100   ;;  %s2249_s30 = smov [#allocation12]  }
  0x3f   :  { %875 = vmatpush1.msra.mxu1 %v2351_v27  ;;  %709 = vmatprep.subr.mxu0 %v627_v28  ;;  %v2368_v39 = vld [vmem:[#allocation10 + $0x10] sm:$0xff]  ;;  %v2370_v41 = vld [vmem:[#allocation10 + $0x8] sm:$0xff]  ;;  %v620_v42 = vld [vmem:[#allocation9] sm:$0xff] }
  0x40   :  { %876 = vmatprep.subr.mxu1 %v2354_v29  ;;  %710 = vmatpush1.msra.mxu0 %v626_v30  ;;  %v2374_v43 = vld [vmem:[#allocation10] sm:$0xff]  ;;  %v2404_v51 = vld [vmem:[%s2954_s2] ss:$0 sm:$0xff] }
  0x41   :  { %877 = vmatpush1.msra.mxu1 %v2357_v31  ;;  %711 = vmatprep.subr.mxu0 %v625_v32  ;;  %v2410_v53 = vld [vmem:[%s2955_s3] ss:$0 sm:$0xff] }
  0x42   :  { %878 = vmatprep.subr.mxu1 %v2360_v33  ;;  %712 = vmatpush1.msra.mxu0 %v624_v34  ;;  %v636_v59 = vld [vmem:[%s2958_s6] sm:$0x3]  ;;  %s2234_s6 = smov 64  }
  0x43   :  { %879 = vmatpush1.msra.mxu1 %v2362_v35  ;;  %713 = vmatprep.subr.mxu0 %v623_v36  ;;  %v2436_v63 = vrot.slane %v636_v59, %v640_v60 }
  0x44   :  { %880 = vmatprep.subr.mxu1 %v2365_v37  ;;  %714 = vmatpush1.msra.mxu0 %v622_v38 }
  0x45   :  { %881 = vmatpush1.msra.mxu1 %v2368_v39  ;;  %715 = vmatprep.subr.mxu0 %v621_v40 }
  0x46   :  { %882 = vmatprep.subr.mxu1 %v2370_v41  ;;  %716 = vmatpush1.msra.mxu0 %v620_v42 }
  0x47   :  { %749 = vmatprep.mubr.f32.mxu0 %v2233_v44  ;;  %883 = vmatpush1.msra.mxu1 %v2374_v43 }
  0x48   :  { %916 = vmatprep.mubr.f32.mxu1 %v2233_v44  ;;  %972 = vmatprep.subr.mxu1 %v2330_v13 }
  0x49   :  { %917 = vmatmul.mubr.f32.vlgmr.msra.gmra.mxu1 %v2233_v44  ;;  %1180 = vmatprep.subr.mxu0 %v2330_v13 }
  0x4a   :  { %973 = vmatpush1.msra.mxu1 %v2333_v15  ;;  %1020 = vmatprep.mubr.f32.mxu1 %v2233_v44 }
  0x4b   :  { %974 = vmatprep.subr.mxu1 %v2336_v17 }
  0x4c   :  { %975 = vmatpush1.msra.mxu1 %v2339_v19 }
  0x4d   :  { %976 = vmatprep.subr.mxu1 %v2342_v21 }
  0x4e   :  { %977 = vmatpush1.msra.mxu1 %v2345_v23 }
  0x4f   :  { %978 = vmatprep.subr.mxu1 %v2348_v25 }
  0x50   :  { %979 = vmatpush1.msra.mxu1 %v2351_v27 }
  0x51   :  { %980 = vmatprep.subr.mxu1 %v2354_v29 }
  0x52   :  { %981 = vmatpush1.msra.mxu1 %v2357_v31 }
  0x53   :  { %982 = vmatprep.subr.mxu1 %v2360_v33 }
  0x54   :  { %983 = vmatpush1.msra.mxu1 %v2362_v35 }
  0x55   :  { %984 = vmatprep.subr.mxu1 %v2365_v37 }
  0x56   :  { %985 = vmatpush1.msra.mxu1 %v2368_v39 }
  0x57   :  { %986 = vmatprep.subr.mxu1 %v2370_v41 }
  0x58   :  { %987 = vmatpush1.msra.mxu1 %v2374_v43 }
  0x59   :  { %1076 = vmatprep.subr.mxu1 %v2330_v13 }
  0xa8   :  { %v133_v5 = vpop.permute.xlu1 %132 }
  0xa9   :  { %v2321_v6 = vadd.f32 %v133_v5, %v2315_v1  ;;  %v644_v5 = vsub.s32 1, %v639_v58 }
  0xab   :  { %137 = vrot.lane.b32.xlu1 %v2321_v6, %s2232_s5 }
  0xc2   :  { %v98_v7 = vpop.xlane.xlu0 %97 }
  0xc3   :  { %v100_v8 = vmul.f32 0.016666668, %v98_v7  ;;  %v2441_v7 = vrot.slane %v636_v59, %v644_v5 }
  0xc5   :  { %v2325_v9 = vsub.f32 %v94_v3, %v100_v8 }
  0xc7   :  { %v102_v10 = vmul.f32 %v2325_v9, %v2325_v9 }
  0xc9   :  { %v103_v11 = vsel %vm95_vm0, %v102_v10, 0.0 }
  0xca   :  { %104 = vadd.xlane.f32.xlu0 %v103_v11 }
 0x11d   :  { %v138_v45 = vpop.permute.xlu1 %137 }
 0x11e   :  { %v140_v46 = vsel %vm95_vm0, %v138_v45, 0.0 }
 0x11f   :  { %141 = vadd.xlane.f32.xlu0 %v140_v46 }
 0x153   :  { %v105_v47 = vpop.xlane.xlu0 %104 }
 0x154   :  { %v106_v48 = vmul.f32 0.016666668, %v105_v47 }
 0x156   :  { %v107_v49 = vadd.f32 1e-05, %v106_v48 }
 0x158   :  { %1997 = vrsqrt.f32 %v107_v49 }
 0x165   :  { %v1998_v50 = vpop.eup %1997 }
 0x166   :  { %v109_v52 = vmul.f32 %v1998_v50, %v2325_v9  ;;  %v918_v9 = vpop.f32.mrf.mxu1 }
 0x168   :  { %v116_v54 = vmul.f32 %v2404_v51, %v109_v52  ;;  %v920_v12 = vpop.f32.mrf.mxu1  ;;  %v1939_v52 = vld [vmem:[#allocation7 + $0x2] ss:$0 sm:$0xff] }
 0x16a   :  { %v123_v55 = vadd.f32 %v2410_v53, %v116_v54 }
 0x16c   :  { %124 = vst.msk [vmem:[#allocation2] sm:$0xff] %vm95_vm0, %v123_v55 }
 0x173   :  { %v610_v56 = vld [vmem:[#allocation2] sm:$0xff] }
 0x174   :  { %1949 = vmatmul.mubr.msk.f32.vlgmr.msra.gmra.mxu0 %vm95_vm0, %v610_v56 }
 0x175   :  { %755 = vmatprep.mubr.f32.mxu0 %v2233_v44  ;;  %1181 = vmatpush1.msra.mxu0 %v2333_v15 }
 0x176   :  { %1182 = vmatprep.subr.mxu0 %v2336_v17 }
 0x177   :  { %1183 = vmatpush1.msra.mxu0 %v2339_v19 }
 0x178   :  { %1184 = vmatprep.subr.mxu0 %v2342_v21 }
 0x179   :  { %1185 = vmatpush1.msra.mxu0 %v2345_v23 }
 0x17a   :  { %1186 = vmatprep.subr.mxu0 %v2348_v25 }
 0x17b   :  { %1187 = vmatpush1.msra.mxu0 %v2351_v27 }
 0x17c   :  { %1188 = vmatprep.subr.mxu0 %v2354_v29 }
 0x17d   :  { %1189 = vmatpush1.msra.mxu0 %v2357_v31 }
 0x17e   :  { %1190 = vmatprep.subr.mxu0 %v2360_v33 }
 0x17f   :  { %1191 = vmatpush1.msra.mxu0 %v2362_v35 }
 0x180   :  { %1192 = vmatprep.subr.mxu0 %v2365_v37 }
 0x181   :  { %1193 = vmatpush1.msra.mxu0 %v2368_v39 }
 0x182   :  { %1194 = vmatprep.subr.mxu0 %v2370_v41 }
 0x183   :  { %1195 = vmatpush1.msra.mxu0 %v2374_v43 }
 0x184   :  { %1388 = vmatprep.subr.mxu0 %v2330_v13 }
 0x1a8   :  { %v142_v61 = vpop.xlane.xlu0 %141 }
 0x1a9   :  { %v143_v62 = vmul.f32 0.016666668, %v142_v61 }
 0x1ab   :  { %v144_v0 = vsub.f32 %v2321_v6, %v143_v62 }
 0x1ad   :  { %v145_v2 = vmul.f32 %v144_v0, %v144_v0 }
 0x1af   :  { %147 = vrot.lane.b32.xlu1 %v145_v2, %s2232_s5 }
 0x221   :  { %v148_v3 = vpop.permute.xlu1 %147 }
 0x222   :  { %v150_v4 = vsel %vm95_vm0, %v148_v3, 0.0 }
 0x223   :  { %151 = vadd.xlane.f32.xlu1 %v150_v4 }
 0x234   :  { %v751_v8 = vpop.f32.mrf.mxu0 }
 0x235   :  { %v752_v6 = vadd.f32 %v751_v8, %v2436_v63 }
 0x236   :  { %v753_v10 = vpop.f32.mrf.mxu0 }
 0x237   :  { %v754_v11 = vadd.f32 %v753_v10, %v2441_v7  ;;  %v923_v18 = vadd.f32 %v918_v9, %v752_v6 }
 0x239   :  { %v924_v14 = vadd.f32 %v920_v12, %v754_v11  ;;  %v925_v20 = vmul.f32 0.5, %v923_v18 }
 0x23b   :  { %1999 = vtanh.f32 %v924_v14  ;;  %v926_v55 = vmul.f32 0.5, %v924_v14 }
 0x23c   :  { %2001 = vtanh.f32 %v925_v20 }
 0x248   :  { %v2000_v16 = vpop.eup %1999 }
 0x249   :  { %936 = vrot.lane.b32.xlu0 %v2000_v16, %s2234_s6  ;;  %v2002_v22 = vpop.eup %2001 }
 0x24a   :  { %v929_v24 = vmul.f32 0.5, %v2002_v22 }
 0x24c   :  { %v931_v26 = vadd.f32 0.5, %v929_v24 }
 0x24e   :  { %v934_v38 = vmul.f32 0.0, %v931_v26 }
 0x2ac   :  { %v152_v32 = vpop.xlane.xlu1 %151 }
 0x2ad   :  { %v153_v34 = vmul.f32 0.016666668, %v152_v32 }
 0x2af   :  { %v154_v36 = vadd.f32 1e-05, %v153_v34 }
 0x2b1   :  { %2003 = vrsqrt.f32 %v154_v36 }
 0x2bb   :  { %v937_v28 = vpop.permute.xlu0 %936 }
 0x2bc   :  { %v939_v30 = vmul.f32 %v937_v28, %v931_v26 }
 0x2be   :  { %941 = vrot.lane.b32.xlu0 %v939_v30, %s2234_s6  ;;  %v2004_v45 = vpop.eup %2003 }
 0x2bf   :  { %v156_v47 = vmul.f32 %v2004_v45, %v144_v0  ;;  %v2459_v0 = vld [vmem:[#allocation4 + $0x8] sm:$0xff] }
 0x2c2   :  { %157 = vrot.lane.b32.xlu0 %v2404_v51, %s2231_s4 }
 0x2c6   :  { %161 = vrot.lane.b32.xlu0 %v2410_v53, %s2231_s4  ;;  %s1924_s4 = sshll.u32 %s2249_s30, 4  ;;  %s1925_s4 = int_to_ptr.vmem [resolvable:$true] %s1924_s4 }
 0x2c7   :  { %p2200_p7 = scmp.lt.s32.totalorder %s1925_s4, %s1925_s4 }
 0x330   :  { %v942_v40 = vpop.permute.xlu0 %941 }
 0x331   :  { %v2451_v42 = vadd.f32 %v942_v40, %v934_v38 }
 0x333   :  { %2005 = vtanh.f32 %v2451_v42 }
 0x334   :  { %v158_v46 = vpop.permute.xlu0 %157  ;;  %2007 = vtanh.f32 %v926_v55  ;;  %v1942_v55 = vld [vmem:[#allocation7 + $0x5] ss:$0 sm:$0xff] }
 0x335   :  { %v160_v48 = vmul.f32 %v158_v46, %v156_v47 }
 0x338   :  { %v162_v49 = vpop.permute.xlu0 %161 }
 0x339   :  { %v164_v50 = vadd.f32 %v162_v49, %v160_v48 }
 0x33b   :  { %166 = vrot.lane.b32.xlu0 %v164_v50, %s2232_s5  ;;  %s2195_s5 = scalar_lea.vmem %s1925_s4, 128 }
 0x33c   :  { %p2196_p6 = scmp.ne.s32.totalorder %s1925_s4, %s2195_s5  ;;  %p2201_p8 = scmp.lt.s32.totalorder %s2195_s5, %s2195_s5 }
 0x33e   :  { %p2202_p9 = por %p2201_p8, %p2200_p7 }
 0x33f   :  { %178 = vrot.lane.b32.xlu0 %v1939_v52, %s2235_s15 }
 0x340   :  { %v2006_v54 = vpop.eup %2005  ;;  %p2203_p10 = pnand %p2202_p9, %p2196_p6 }
 0x341   :  { %947 = vrot.lane.b32.xlu1 %v2006_v54, %s2234_s6  ;;  %v2008_v56 = vpop.eup %2007  ;;  %v1940_v54 = vld [vmem:[#allocation7 + $0x3] ss:$0 sm:$0xff] }
 0x342   :  { %v930_v58 = vmul.f32 0.5, %v2008_v56  ;;  %v1944_v56 = vld [vmem:[#allocation7 + $0x7] ss:$0 sm:$0xff] }
 0x344   :  { %v932_v60 = vadd.f32 0.5, %v930_v58 }
 0x3ad   :  { %v167_v57 = vpop.permute.xlu0 %166 }
 0x3ae   :  { %169 = vst.msk [vmem:[#allocation2 + $0x8] sm:$0xff] %vm95_vm0, %v167_v57  ;;  %v1946_v57 = vld [vmem:[#allocation7 + $0x9] ss:$0 sm:$0xff] }
 0x3b1   :  { %v179_v59 = vpop.permute.xlu0 %178 }
 0x3b2   :  { %v181_v61 = vadd.f32 %v179_v59, %v2315_v1  ;;  %v182_v4 = vadd.f32 %v179_v59, %v2459_v0 }
 0x3b3   :  { %v948_v62 = vpop.permute.xlu1 %947 }
 0x3b4   :  { %v950_v2 = vmul.f32 %v948_v62, %v932_v60  ;;  %185 = vrot.lane.b32.xlu0 %v181_v61, %s2225_s13 }
 0x3b5   :  { %v611_v3 = vld [vmem:[#allocation2 + $0x8] sm:$0xff] }
 0x3b6   :  { %1950 = vmatmul.mubr.msk.f32.gmra.mxu0 %vm95_vm0, %v611_v3  ;;  %1959 = vmatmul.mubr.msk.f32.vlgmr.msra.gmra.mxu1 %vm848_vm2, %v950_v2 }
 0x3b7   :  { %1077 = vmatpush1.msra.mxu1 %v2333_v15  ;;  %1124 = vmatprep.mubr.f32.mxu1 %v2233_v44 }
 0x3b8   :  { %187 = vrot.lane.b32.xlu0 %v182_v4, %s2225_s13  ;;  %1078 = vmatprep.subr.mxu1 %v2336_v17 }
 0x3b9   :  { %1079 = vmatpush1.msra.mxu1 %v2339_v19  ;;  %761 = vmatprep.mubr.f32.mxu0 %v2233_v44 }
 0x3ba   :  { %1080 = vmatprep.subr.mxu1 %v2342_v21 }
 0x3bb   :  { %1081 = vmatpush1.msra.mxu1 %v2345_v23 }
 0x3bc   :  { %1082 = vmatprep.subr.mxu1 %v2348_v25 }
 0x3bd   :  { %1083 = vmatpush1.msra.mxu1 %v2351_v27 }
 0x3be   :  { %1084 = vmatprep.subr.mxu1 %v2354_v29 }
 0x3bf   :  { %1085 = vmatpush1.msra.mxu1 %v2357_v31 }
 0x3c0   :  { %1086 = vmatprep.subr.mxu1 %v2360_v33 }
 0x3c1   :  { %1087 = vmatpush1.msra.mxu1 %v2362_v35 }
 0x3c2   :  { %1088 = vmatprep.subr.mxu1 %v2365_v37 }
 0x3c3   :  { %1089 = vmatpush1.msra.mxu1 %v2368_v39 }
 0x3c4   :  { %1090 = vmatprep.subr.mxu1 %v2370_v41 }
 0x3c5   :  { %1091 = vmatpush1.msra.mxu1 %v2374_v43 }
 0x3c6   :  { %1284 = vmatprep.subr.mxu1 %v2330_v13 }
 0x426   :  { %v186_v1 = vpop.permute.xlu0 %185 }
 0x42a   :  { %v188_v5 = vpop.permute.xlu0 %187 }
 0x42b   :  { %v190_v8 = vsel %vm189_vm3, %v186_v1, %v188_v5 }
 0x42c   :  { %v192_v9 = vsel %vm95_vm0, %v190_v8, 0.0 }
 0x42d   :  { %193 = vadd.xlane.f32.xlu0 %v192_v9 }
 0x476   :  { %v757_v10 = vpop.f32.mrf.mxu0  ;;  %v1022_v12 = vpop.f32.mrf.mxu1 }
 0x477   :  { %v758_v11 = vadd.f32 %v757_v10, %v2436_v63 }
 0x478   :  { %v759_v16 = vpop.f32.mrf.mxu0  ;;  %v1024_v18 = vpop.f32.mrf.mxu1 }
 0x479   :  { %v1027_v14 = vadd.f32 %v1022_v12, %v758_v11  ;;  %v760_v6 = vadd.f32 %v759_v16, %v2441_v7  ;;  %v1943_v16 = vld [vmem:[#allocation7 + $0x6] ss:$0 sm:$0xff] }
 0x47b   :  { %v2488_v20 = vadd.f32 %v1024_v18, %v760_v6  ;;  %v1029_v36 = vmul.f32 0.5, %v1027_v14  ;;  %v1945_v6 = vld [vmem:[#allocation7 + $0x8] ss:$0 sm:$0xff] }
 0x47d   :  { %2009 = vtanh.f32 %v2488_v20 }
 0x47e   :  { %2011 = vtanh.f32 %v1029_v36 }
 0x48a   :  { %v2010_v34 = vpop.eup %2009 }
 0x48b   :  { %v2012_v38 = vpop.eup %2011 }
 0x48c   :  { %v1033_v45 = vmul.f32 0.5, %v2012_v38 }
 0x48e   :  { %v1035_v49 = vadd.f32 0.5, %v1033_v45  ;;  %v281_v45 = vld [vmem:[#allocation4 + $0x10] sm:$0xff] }
 0x490   :  { %v1038_v62 = vmul.f32 %v1035_v49, %v2451_v42  ;;  %v1941_v42 = vld [vmem:[#allocation7 + $0x4] ss:$0 sm:$0xff] }
 0x4b6   :  { %v194_v22 = vpop.xlane.xlu0 %193 }
 0x4b7   :  { %v195_v24 = vmul.f32 0.016666668, %v194_v22 }
 0x4b9   :  { %v196_v26 = vsub.f32 %v181_v61, %v195_v24  ;;  %v197_v30 = vsub.f32 %v182_v4, %v195_v24  ;;  %v1030_v24 = vmul.f32 0.5, %v2488_v20 }
 0x4bb   :  { %v198_v28 = vmul.f32 %v196_v26, %v196_v26  ;;  %v199_v32 = vmul.f32 %v197_v30, %v197_v30 }
 0x4bd   :  { %202 = vrot.lane.b32.xlu1 %v198_v28, %s2225_s13 }
 0x4c1   :  { %204 = vrot.lane.b32.xlu1 %v199_v32, %s2225_s13 }
 0x4c5   :  { %1040 = vrot.lane.b32.xlu1 %v2010_v34, %s2234_s6 }
 0x52f   :  { %v203_v40 = vpop.permute.xlu1 %202 }
 0x533   :  { %v205_v46 = vpop.permute.xlu1 %204 }
 0x534   :  { %v206_v47 = vsel %vm189_vm3, %v203_v40, %v205_v46 }
 0x535   :  { %v208_v48 = vsel %vm95_vm0, %v206_v47, 0.0 }
 0x536   :  { %209 = vadd.xlane.f32.xlu1 %v208_v48 }
 0x537   :  { %v1041_v50 = vpop.permute.xlu1 %1040 }
 0x538   :  { %v1043_v52 = vmul.f32 %v1041_v50, %v1035_v49  ;;  %v391_v50 = vld [vmem:[#allocation4 + $0x18] sm:$0xff] }
 0x53a   :  { %1045 = vrot.lane.b32.xlu0 %v1043_v52, %s2234_s6 }
 0x53e   :  { %221 = vrot.lane.b32.xlu0 %v2410_v53, %s2235_s15 }
 0x547   :  { %216 = vrot.lane.b32.xlu1 %v2404_v51, %s2235_s15 }
 0x54b   :  { %242 = vrot.lane.b32.xlu1 %v1940_v54, %s2236_s16 }
 0x54f   :  { %352 = vrot.lane.b32.xlu1 %v1942_v55, %s2237_s17  ;;  %v501_v55 = vld [vmem:[#allocation4 + $0x20] sm:$0xff] }
 0x553   :  { %462 = vrot.lane.b32.xlu1 %v1944_v56, %s2238_s18 }
 0x557   :  { %572 = vrot.lane.b32.xlu1 %v1946_v57, %s2239_s19 }
 0x5ac   :  { %v1046_v61 = vpop.permute.xlu0 %1045 }
 0x5ad   :  { %v2506_v2 = vadd.f32 %v1046_v61, %v1038_v62 }
 0x5b0   :  { %v222_v8 = vpop.permute.xlu0 %221 }
 0x5bf   :  { %v210_v58 = vpop.xlane.xlu1 %209 }
 0x5c0   :  { %v211_v59 = vmul.f32 0.016666668, %v210_v58 }
 0x5c2   :  { %v212_v60 = vadd.f32 1e-05, %v211_v59 }
 0x5c3   :  { %v217_v4 = vpop.permute.xlu1 %216 }
 0x5c4   :  { %2013 = vrsqrt.f32 %v212_v60 }
 0x5c5   :  { %2015 = vtanh.f32 %v2506_v2 }
 0x5c6   :  { %2017 = vtanh.f32 %v1030_v24 }
 0x5c7   :  { %v243_v18 = vpop.permute.xlu1 %242 }
 0x5c8   :  { %v2516_v22 = vadd.f32 %v243_v18, %v2459_v0 }
 0x5cb   :  { %v353_v46 = vpop.permute.xlu1 %352 }
 0x5d1   :  { %v2014_v3 = vpop.eup %2013 }
 0x5d2   :  { %v214_v1 = vmul.f32 %v2014_v3, %v196_v26  ;;  %v215_v5 = vmul.f32 %v2014_v3, %v197_v30  ;;  %v2016_v14 = vpop.eup %2015 }
 0x5d3   :  { %v2018_v26 = vpop.eup %2017 }
 0x5d4   :  { %v219_v9 = vmul.f32 %v217_v4, %v214_v1  ;;  %v220_v10 = vmul.f32 %v217_v4, %v215_v5  ;;  %v1034_v30 = vmul.f32 0.5, %v2018_v26 }
 0x5d6   :  { %v224_v11 = vadd.f32 %v222_v8, %v219_v9  ;;  %v225_v12 = vadd.f32 %v222_v8, %v220_v10  ;;  %v1036_v36 = vadd.f32 0.5, %v1034_v30 }
 0x5d8   :  { %228 = vrot.lane.b32.xlu0 %v224_v11, %s2225_s13 }
 0x5dc   :  { %230 = vrot.lane.b32.xlu0 %v225_v12, %s2225_s13  ;;  %s2243_s13 = smov 76  }
 0x5e0   :  { %1051 = vrot.lane.b32.xlu0 %v2016_v14, %s2234_s6 }
 0x5e4   :  { %288 = vrot.lane.b32.xlu0 %v1941_v42, %s2240_s20 }
 0x5e8   :  { %398 = vrot.lane.b32.xlu0 %v1943_v16, %s2241_s21 }
 0x5ec   :  { %508 = vrot.lane.b32.xlu0 %v1945_v6, %s2242_s22 }
 0x5f0   :  { %247 = vrot.lane.b32.xlu0 %v2516_v22, %s2243_s13 }
 0x64a   :  { %v229_v28 = vpop.permute.xlu0 %228 }
 0x64e   :  { %v231_v32 = vpop.permute.xlu0 %230 }
 0x64f   :  { %v232_v34 = vsel %vm189_vm3, %v229_v28, %v231_v32 }
 0x650   :  { %234 = vst.msk [vmem:[#allocation2 + $0x10] sm:$0xff] %vm95_vm0, %v232_v34 }
 0x652   :  { %v1052_v38 = vpop.permute.xlu0 %1051 }
 0x653   :  { %v1054_v40 = vmul.f32 %v1052_v38, %v1036_v36 }
 0x655   :  { %1960 = vmatmul.mubr.msk.f32.vlgmr.msra.gmra.mxu1 %vm848_vm2, %v1054_v40 }
 0x656   :  { %v289_v47 = vpop.permute.xlu0 %288  ;;  %1285 = vmatpush1.msra.mxu1 %v2333_v15  ;;  %1332 = vmatprep.mubr.f32.mxu1 %v2233_v44  ;;  %v2538_v15 = vadd.f32 %v353_v46, %v281_v45 }
 0x657   :  { %v612_v20 = vld [vmem:[#allocation2 + $0x10] sm:$0xff]  ;;  %v2527_v48 = vadd.f32 %v289_v47, %v2459_v0  ;;  %v2529_v49 = vadd.f32 %v289_v47, %v281_v45  ;;  %1286 = vmatprep.subr.mxu1 %v2336_v17  ;;  %v463_v0 = vpop.permute.xlu1 %462 }
 0x658   :  { %1951 = vmatmul.mubr.msk.f32.gmra.mxu0 %vm95_vm0, %v612_v20  ;;  %1287 = vmatpush1.msra.mxu1 %v2339_v19  ;;  %v2552_v54 = vadd.f32 %v463_v0, %v391_v50 }
 0x659   :  { %295 = vrot.lane.b32.xlu1 %v2527_v48, %s2229_s24  ;;  %297 = vrot.lane.b32.xlu0 %v2529_v49, %s2229_s24 }
 0x65a   :  { %v399_v52 = vpop.permute.xlu0 %398  ;;  %767 = vmatprep.mubr.f32.mxu0 %v2233_v44  ;;  %1288 = vmatprep.subr.mxu1 %v2342_v21 }
 0x65b   :  { %v2542_v17 = vadd.f32 %v399_v52, %v281_v45  ;;  %1289 = vmatpush1.msra.mxu1 %v2345_v23  ;;  %v2546_v19 = vadd.f32 %v399_v52, %v391_v50  ;;  %v573_v56 = vpop.permute.xlu1 %572 }
 0x65c   :  { %1290 = vmatprep.subr.mxu1 %v2348_v25 }
 0x65d   :  { %405 = vrot.lane.b32.xlu0 %v2542_v17, %s2244_s23  ;;  %357 = vrot.lane.b32.xlu1 %v2538_v15, %s2245_s1 }
 0x65e   :  { %v509_v21 = vpop.permute.xlu0 %508  ;;  %1291 = vmatpush1.msra.mxu1 %v2351_v27  ;;  %v2572_v27 = vadd.f32 %v573_v56, %v501_v55 }
 0x65f   :  { %1292 = vmatprep.subr.mxu1 %v2354_v29  ;;  %v2561_v23 = vadd.f32 %v509_v21, %v391_v50  ;;  %v2563_v25 = vadd.f32 %v509_v21, %v501_v55 }
 0x660   :  { %1293 = vmatpush1.msra.mxu1 %v2357_v31 }
 0x661   :  { %407 = vrot.lane.b32.xlu1 %v2546_v19, %s2244_s23  ;;  %467 = vrot.lane.b32.xlu0 %v2552_v54, %s2246_s25 }
 0x662   :  { %1294 = vmatprep.subr.mxu1 %v2360_v33  ;;  %v248_v29 = vpop.permute.xlu0 %247 }
 0x663   :  { %1295 = vmatpush1.msra.mxu1 %v2362_v35  ;;  %v250_v31 = vsel %vm95_vm0, %v248_v29, 0.0 }
 0x664   :  { %1296 = vmatprep.subr.mxu1 %v2365_v37 }
 0x665   :  { %515 = vrot.lane.b32.xlu1 %v2561_v23, %s2247_s26  ;;  %517 = vrot.lane.b32.xlu0 %v2563_v25, %s2247_s26 }
 0x666   :  { %1297 = vmatpush1.msra.mxu1 %v2368_v39 }
 0x667   :  { %1298 = vmatprep.subr.mxu1 %v2370_v41 }
 0x668   :  { %1299 = vmatpush1.msra.mxu1 %v2374_v43 }
 0x669   :  { %577 = vrot.lane.b32.xlu1 %v2572_v27, %s2248_s27  ;;  %1492 = vmatprep.subr.mxu1 %v2330_v13 }
 0x684   :  { %251 = vadd.xlane.f32.xlu0 %v250_v31 }
 0x6cb   :  { %v298_v33 = vpop.permute.xlu0 %297  ;;  %v296_v35 = vpop.permute.xlu1 %295 }
 0x6cc   :  { %v300_v37 = vsel %vm299_vm4, %v296_v35, %v298_v33 }
 0x6cd   :  { %v302_v39 = vsel %vm95_vm0, %v300_v37, 0.0 }
 0x6ce   :  { %303 = vadd.xlane.f32.xlu1 %v302_v39 }
 0x6cf   :  { %v406_v41 = vpop.permute.xlu0 %405  ;;  %v358_v43 = vpop.permute.xlu1 %357 }
 0x6d0   :  { %v360_v57 = vsel %vm95_vm0, %v358_v43, 0.0 }
 0x6d1   :  { %361 = vadd.xlane.f32.xlu0 %v360_v57 }
 0x6d3   :  { %v468_v58 = vpop.permute.xlu0 %467  ;;  %v408_v13 = vpop.permute.xlu1 %407 }
 0x6d4   :  { %v410_v59 = vsel %vm409_vm5, %v406_v41, %v408_v13  ;;  %v470_v3 = vsel %vm95_vm0, %v468_v58, 0.0 }
 0x6d5   :  { %v412_v60 = vsel %vm95_vm0, %v410_v59, 0.0 }
 0x6d6   :  { %413 = vadd.xlane.f32.xlu0 %v412_v60 }
 0x6d7   :  { %v518_v61 = vpop.permute.xlu0 %517  ;;  %v516_v62 = vpop.permute.xlu1 %515 }
 0x6d8   :  { %v520_v4 = vsel %vm519_vm6, %v516_v62, %v518_v61 }
 0x6d9   :  { %v522_v1 = vsel %vm95_vm0, %v520_v4, 0.0 }
 0x6da   :  { %471 = vadd.xlane.f32.xlu0 %v470_v3  ;;  %523 = vadd.xlane.f32.xlu1 %v522_v1 }
 0x6db   :  { %v578_v5 = vpop.permute.xlu1 %577 }
 0x6dc   :  { %v580_v8 = vsel %vm95_vm0, %v578_v5, 0.0 }
 0x6de   :  { %581 = vadd.xlane.f32.xlu0 %v580_v8 }
 0x70d   :  { %v252_v9 = vpop.xlane.xlu0 %251 }
 0x70e   :  { %v253_v10 = vmul.f32 0.016666668, %v252_v9 }
 0x710   :  { %v2591_v11 = vsub.f32 %v2516_v22, %v253_v10 }
 0x712   :  { %v255_v12 = vmul.f32 %v2591_v11, %v2591_v11 }
 0x714   :  { %257 = vrot.lane.b32.xlu1 %v255_v12, %s2243_s13 }
 0x715   :  { %v1126_v16 = vpop.f32.mrf.mxu1 }
 0x717   :  { %v1128_v41 = vpop.f32.mrf.mxu1 }
 0x718   :  { %v763_v14 = vpop.f32.mrf.mxu0 }
 0x719   :  { %v764_v42 = vadd.f32 %v763_v14, %v2436_v63 }
 0x71b   :  { %v2597_v6 = vadd.f32 %v1126_v16, %v764_v42 }
 0x71d   :  { %v1133_v16 = vmul.f32 0.5, %v2597_v6 }
 0x757   :  { %v304_v18 = vpop.xlane.xlu1 %303 }
 0x758   :  { %v305_v24 = vmul.f32 0.016666668, %v304_v18 }
 0x75a   :  { %v2600_v26 = vsub.f32 %v2527_v48, %v305_v24  ;;  %v2603_v28 = vsub.f32 %v2529_v49, %v305_v24  ;;  %v362_v22 = vpop.xlane.xlu0 %361 }
 0x75b   :  { %v363_v30 = vmul.f32 0.016666668, %v362_v22 }
 0x75c   :  { %v309_v32 = vmul.f32 %v2603_v28, %v2603_v28  ;;  %v308_v34 = vmul.f32 %v2600_v26, %v2600_v26 }
 0x75d   :  { %v2610_v36 = vsub.f32 %v2538_v15, %v363_v30 }
 0x75e   :  { %314 = vrot.lane.b32.xlu1 %v309_v32, %s2229_s24  ;;  %312 = vrot.lane.b32.xlu0 %v308_v34, %s2229_s24 }
 0x75f   :  { %v414_v38 = vpop.xlane.xlu0 %413  ;;  %v365_v40 = vmul.f32 %v2610_v36, %v2610_v36 }
 0x760   :  { %v415_v45 = vmul.f32 0.016666668, %v414_v38 }
 0x762   :  { %v2617_v46 = vsub.f32 %v2542_v17, %v415_v45  ;;  %v2620_v47 = vsub.f32 %v2546_v19, %v415_v45  ;;  %367 = vrot.lane.b32.xlu1 %v365_v40, %s2245_s1 }
 0x763   :  { %v472_v20 = vpop.xlane.xlu0 %471  ;;  %v524_v48 = vpop.xlane.xlu1 %523 }
 0x764   :  { %v473_v49 = vmul.f32 0.016666668, %v472_v20  ;;  %v525_v15 = vmul.f32 0.016666668, %v524_v48  ;;  %v418_v50 = vmul.f32 %v2617_v46, %v2617_v46  ;;  %v419_v52 = vmul.f32 %v2620_v47, %v2620_v47 }
 0x766   :  { %v2628_v0 = vsub.f32 %v2552_v54, %v473_v49  ;;  %v2631_v17 = vsub.f32 %v2561_v23, %v525_v15  ;;  %422 = vrot.lane.b32.xlu1 %v418_v50, %s2244_s23  ;;  %424 = vrot.lane.b32.xlu0 %v419_v52, %s2244_s23  ;;  %v2636_v55 = vsub.f32 %v2563_v25, %v525_v15 }
 0x767   :  { %v582_v19 = vpop.xlane.xlu0 %581 }
 0x768   :  { %v583_v21 = vmul.f32 0.016666668, %v582_v19  ;;  %v475_v56 = vmul.f32 %v2628_v0, %v2628_v0  ;;  %v528_v29 = vmul.f32 %v2631_v17, %v2631_v17  ;;  %v529_v23 = vmul.f32 %v2636_v55, %v2636_v55 }
 0x76a   :  { %v2643_v54 = vsub.f32 %v2572_v27, %v583_v21  ;;  %477 = vrot.lane.b32.xlu1 %v475_v56, %s2246_s25  ;;  %532 = vrot.lane.b32.xlu0 %v528_v29, %s2247_s26  ;;  %v765_v27 = vpop.f32.mrf.mxu0 }
 0x76b   :  { %v766_v35 = vadd.f32 %v765_v27, %v2441_v7 }
 0x76c   :  { %v585_v25 = vmul.f32 %v2643_v54, %v2643_v54 }
 0x76d   :  { %v2656_v57 = vadd.f32 %v1128_v41, %v766_v35 }
 0x76e   :  { %534 = vrot.lane.b32.xlu1 %v529_v23, %s2247_s26  ;;  %587 = vrot.lane.b32.xlu0 %v585_v25, %s2248_s27 }
 0x76f   :  { %2019 = vtanh.f32 %v2656_v57 }
 0x770   :  { %2021 = vtanh.f32 %v1133_v16 }
 0x77c   :  { %v2020_v10 = vpop.eup %2019 }
 0x77d   :  { %v2022_v18 = vpop.eup %2021 }
 0x77e   :  { %v1137_v24 = vmul.f32 0.5, %v2022_v18 }
 0x780   :  { %v2695_v30 = vadd.f32 0.5, %v1137_v24 }
 0x786   :  { %v258_v31 = vpop.permute.xlu1 %257 }
 0x787   :  { %v260_v33 = vsel %vm95_vm0, %v258_v31, 0.0 }
 0x78d   :  { %261 = vadd.xlane.f32.xlu0 %v260_v33 }
 0x7d0   :  { %v313_v37 = vpop.permute.xlu0 %312  ;;  %v315_v39 = vpop.permute.xlu1 %314 }
 0x7d1   :  { %v316_v43 = vsel %vm299_vm4, %v313_v37, %v315_v39 }
 0x7d2   :  { %v318_v58 = vsel %vm95_vm0, %v316_v43, 0.0 }
 0x7d3   :  { %319 = vadd.xlane.f32.xlu1 %v318_v58 }
 0x7d4   :  { %v368_v13 = vpop.permute.xlu1 %367 }
 0x7d5   :  { %v370_v59 = vsel %vm95_vm0, %v368_v13, 0.0 }
 0x7d6   :  { %371 = vadd.xlane.f32.xlu0 %v370_v59 }
 0x7d8   :  { %v425_v60 = vpop.permute.xlu0 %424  ;;  %v423_v61 = vpop.permute.xlu1 %422 }
 0x7d9   :  { %v426_v62 = vsel %vm409_vm5, %v423_v61, %v425_v60 }
 0x7da   :  { %v428_v3 = vsel %vm95_vm0, %v426_v62, 0.0 }
 0x7db   :  { %429 = vadd.xlane.f32.xlu0 %v428_v3 }
 0x7dc   :  { %v533_v4 = vpop.permute.xlu0 %532  ;;  %v478_v1 = vpop.permute.xlu1 %477 }
 0x7dd   :  { %v480_v5 = vsel %vm95_vm0, %v478_v1, 0.0 }
 0x7df   :  { %481 = vadd.xlane.f32.xlu0 %v480_v5 }
 0x7e0   :  { %v588_v8 = vpop.permute.xlu0 %587  ;;  %v535_v12 = vpop.permute.xlu1 %534 }
 0x7e1   :  { %v590_v9 = vsel %vm95_vm0, %v588_v8, 0.0  ;;  %v536_v14 = vsel %vm519_vm6, %v533_v4, %v535_v12 }
 0x7e2   :  { %v538_v42 = vsel %vm95_vm0, %v536_v14, 0.0 }
 0x7e3   :  { %591 = vadd.xlane.f32.xlu0 %v590_v9 }
 0x7e4   :  { %1144 = vrot.lane.b32.xlu1 %v2020_v10, %s2234_s6 }
 0x7f9   :  { %271 = vrot.lane.b32.xlu0 %v2410_v53, %s2236_s16 }
 0x7fd   :  { %381 = vrot.lane.b32.xlu0 %v2410_v53, %s2237_s17 }
 0x801   :  { %441 = vrot.lane.b32.xlu0 %v2410_v53, %s2241_s21 }
 0x805   :  { %491 = vrot.lane.b32.xlu0 %v2410_v53, %s2238_s18 }
 0x808   :  { %539 = vadd.xlane.f32.xlu1 %v538_v42 }
 0x809   :  { %551 = vrot.lane.b32.xlu0 %v2410_v53, %s2242_s22 }
 0x80d   :  { %597 = vrot.lane.b32.xlu0 %v2404_v51, %s2239_s19 }
 0x816   :  { %v262_v38 = vpop.xlane.xlu0 %261 }
 0x817   :  { %v263_v40 = vmul.f32 0.016666668, %v262_v38 }
 0x819   :  { %267 = vrot.lane.b32.xlu1 %v2404_v51, %s2236_s16 }
 0x81d   :  { %326 = vrot.lane.b32.xlu1 %v2404_v51, %s2240_s20 }
 0x821   :  { %331 = vrot.lane.b32.xlu1 %v2410_v53, %s2240_s20 }
 0x825   :  { %377 = vrot.lane.b32.xlu1 %v2404_v51, %s2237_s17 }
 0x829   :  { %436 = vrot.lane.b32.xlu1 %v2404_v51, %s2241_s21 }
 0x82d   :  { %487 = vrot.lane.b32.xlu1 %v2404_v51, %s2238_s18 }
 0x831   :  { %546 = vrot.lane.b32.xlu1 %v2404_v51, %s2242_s22  ;;  %v264_v51 = vadd.f32 1e-05, %v263_v40 }
 0x833   :  { %2023 = vrsqrt.f32 %v264_v51 }
 0x840   :  { %v2024_v56 = vpop.eup %2023 }
 0x841   :  { %v266_v31 = vmul.f32 %v2024_v56, %v2591_v11 }
 0x85c   :  { %v320_v22 = vpop.xlane.xlu1 %319 }
 0x85d   :  { %v321_v20 = vmul.f32 0.016666668, %v320_v22 }
 0x85f   :  { %v372_v45 = vpop.xlane.xlu0 %371  ;;  %v322_v48 = vadd.f32 1e-05, %v321_v20 }
 0x860   :  { %v1145_v32 = vpop.permute.xlu1 %1144  ;;  %v373_v49 = vmul.f32 0.016666668, %v372_v45 }
 0x861   :  { %v1147_v34 = vmul.f32 %v1145_v32, %v2695_v30  ;;  %2025 = vrsqrt.f32 %v322_v48 }
 0x862   :  { %v374_v50 = vadd.f32 1e-05, %v373_v49 }
 0x863   :  { %1149 = vrot.lane.b32.xlu1 %v1147_v34, %s2234_s6 }
 0x864   :  { %v430_v6 = vpop.xlane.xlu0 %429  ;;  %2027 = vrsqrt.f32 %v374_v50 }
 0x865   :  { %v431_v52 = vmul.f32 0.016666668, %v430_v6 }
 0x867   :  { %601 = vrot.lane.b32.xlu1 %v2410_v53, %s2239_s19  ;;  %v432_v19 = vadd.f32 1e-05, %v431_v52 }
 0x868   :  { %v482_v15 = vpop.xlane.xlu0 %481 }
 0x869   :  { %v483_v21 = vmul.f32 0.016666668, %v482_v15  ;;  %2029 = vrsqrt.f32 %v432_v19 }
 0x86b   :  { %v484_v53 = vadd.f32 1e-05, %v483_v21 }
 0x86c   :  { %v592_v29 = vpop.xlane.xlu0 %591 }
 0x86d   :  { %2031 = vrsqrt.f32 %v484_v53  ;;  %v593_v15 = vmul.f32 0.016666668, %v592_v29 }
 0x86e   :  { %v2026_v35 = vpop.eup %2025 }
 0x86f   :  { %v324_v58 = vmul.f32 %v2026_v35, %v2600_v26  ;;  %v325_v13 = vmul.f32 %v2026_v35, %v2603_v28  ;;  %v594_v50 = vadd.f32 1e-05, %v593_v15 }
 0x870   :  { %v272_v37 = vpop.permute.xlu0 %271 }
 0x871   :  { %v2028_v61 = vpop.eup %2027 }
 0x872   :  { %v376_v1 = vmul.f32 %v2028_v61, %v2610_v36 }
 0x874   :  { %v382_v62 = vpop.permute.xlu0 %381 }
 0x876   :  { %v2030_v5 = vpop.eup %2029 }
 0x877   :  { %v434_v10 = vmul.f32 %v2030_v5, %v2617_v46  ;;  %v435_v12 = vmul.f32 %v2030_v5, %v2620_v47 }
 0x878   :  { %v442_v28 = vpop.permute.xlu0 %441 }
 0x87a   :  { %v2032_v14 = vpop.eup %2031 }
 0x87b   :  { %v486_v32 = vmul.f32 %v2032_v14, %v2628_v0  ;;  %v2763_v14 = vld [vmem:[#allocation10 + $0x58] sm:$0xff] }
 0x87c   :  { %v492_v34 = vpop.permute.xlu0 %491 }
 0x880   :  { %v552_v48 = vpop.permute.xlu0 %551 }
 0x891   :  { %v540_v23 = vpop.xlane.xlu1 %539 }
 0x892   :  { %v541_v25 = vmul.f32 0.016666668, %v540_v23 }
 0x894   :  { %v542_v39 = vadd.f32 1e-05, %v541_v25 }
 0x895   :  { %v268_v33 = vpop.permute.xlu1 %267 }
 0x896   :  { %v270_v27 = vmul.f32 %v268_v33, %v266_v31  ;;  %2033 = vrsqrt.f32 %v542_v39 }
 0x897   :  { %2035 = vrsqrt.f32 %v594_v50 }
 0x898   :  { %v274_v41 = vadd.f32 %v272_v37, %v270_v27 }
 0x899   :  { %v327_v43 = vpop.permute.xlu1 %326 }
 0x89a   :  { %276 = vrot.lane.b32.xlu0 %v274_v41, %s2243_s13  ;;  %v329_v59 = vmul.f32 %v327_v43, %v324_v58  ;;  %v330_v60 = vmul.f32 %v327_v43, %v325_v13 }
 0x89d   :  { %v332_v11 = vpop.permute.xlu1 %331 }
 0x89e   :  { %v335_v3 = vadd.f32 %v332_v11, %v330_v60  ;;  %v334_v4 = vadd.f32 %v332_v11, %v329_v59 }
 0x8a0   :  { %340 = vrot.lane.b32.xlu0 %v335_v3, %s2229_s24  ;;  %338 = vrot.lane.b32.xlu1 %v334_v4, %s2229_s24  ;;  %v1134_v3 = vmul.f32 0.5, %v2656_v57  ;;  %v2757_v57 = vld [vmem:[#allocation10 + $0x68] sm:$0xff] }
 0x8a1   :  { %v378_v26 = vpop.permute.xlu1 %377 }
 0x8a2   :  { %v380_v8 = vmul.f32 %v378_v26, %v376_v1 }
 0x8a3   :  { %v2034_v36 = vpop.eup %2033 }
 0x8a4   :  { %v384_v9 = vadd.f32 %v382_v62, %v380_v8  ;;  %v544_v47 = vmul.f32 %v2034_v36, %v2631_v17  ;;  %v545_v45 = vmul.f32 %v2034_v36, %v2636_v55  ;;  %v2036_v52 = vpop.eup %2035  ;;  %v1142_v17 = vmul.f32 %v2695_v30, %v2506_v2  ;;  %v598_v55 = vpop.permute.xlu0 %597  ;;  %v2784_v36 = vld [vmem:[#allocation10 + $0x20] sm:$0xff] }
 0x8a5   :  { %v437_v42 = vpop.permute.xlu1 %436  ;;  %v596_v21 = vmul.f32 %v2036_v52, %v2643_v54 }
 0x8a6   :  { %v439_v16 = vmul.f32 %v437_v42, %v434_v10  ;;  %v440_v18 = vmul.f32 %v437_v42, %v435_v12  ;;  %386 = vrot.lane.b32.xlu1 %v384_v9, %s2245_s1  ;;  %v2753_v10 = vld [vmem:[#allocation10 + $0x70] sm:$0xff]  ;;  %v2760_v12 = vld [vmem:[#allocation10 + $0x60] sm:$0xff] }
 0x8a7   :  { %v600_v23 = vmul.f32 %v598_v55, %v596_v21  ;;  %v2766_v42 = vld [vmem:[#allocation10 + $0x50] sm:$0xff] }
 0x8a8   :  { %v444_v24 = vadd.f32 %v442_v28, %v439_v16  ;;  %v445_v22 = vadd.f32 %v442_v28, %v440_v18  ;;  %v2769_v16 = vld [vmem:[#allocation10 + $0x48] sm:$0xff]  ;;  %v2772_v18 = vld [vmem:[#allocation10 + $0x40] sm:$0xff] }
 0x8a9   :  { %v488_v38 = vpop.permute.xlu1 %487 }
 0x8aa   :  { %v490_v40 = vmul.f32 %v488_v38, %v486_v32  ;;  %450 = vrot.lane.b32.xlu1 %v445_v22, %s2244_s23  ;;  %448 = vrot.lane.b32.xlu0 %v444_v24, %s2244_s23  ;;  %v2775_v24 = vld [vmem:[#allocation10 + $0x38] sm:$0xff]  ;;  %v2778_v22 = vld [vmem:[#allocation10 + $0x30] sm:$0xff]  ;;  %v2781_v32 = vld [vmem:[#allocation10 + $0x28] sm:$0xff] }
 0x8ab   :  { %v2790_v38 = vld [vmem:[#allocation10 + $0x10] sm:$0xff] }
 0x8ac   :  { %v494_v46 = vadd.f32 %v492_v34, %v490_v40  ;;  %v2787_v34 = vld [vmem:[#allocation10 + $0x18] sm:$0xff]  ;;  %v2793_v40 = vld [vmem:[#allocation10 + $0x8] sm:$0xff] }
 0x8ad   :  { %v547_v51 = vpop.permute.xlu1 %546 }
 0x8ae   :  { %v549_v20 = vmul.f32 %v547_v51, %v544_v47  ;;  %v550_v6 = vmul.f32 %v547_v51, %v545_v45  ;;  %496 = vrot.lane.b32.xlu0 %v494_v46, %s2246_s25  ;;  %v2796_v46 = vld [vmem:[#allocation10] sm:$0xff]  ;;  %v2799_v47 = vld [vmem:[#allocation10 + $0x78] sm:$0xff] }
 0x8b0   :  { %v554_v0 = vadd.f32 %v552_v48, %v549_v20  ;;  %v555_v49 = vadd.f32 %v552_v48, %v550_v6 }
 0x8b2   :  { %560 = vrot.lane.b32.xlu0 %v555_v49, %s2247_s26  ;;  %558 = vrot.lane.b32.xlu1 %v554_v0, %s2247_s26 }
 0x8d5   :  { %v1150_v19 = vpop.permute.xlu1 %1149 }
 0x8d6   :  { %v2722_v56 = vadd.f32 %v1150_v19, %v1142_v17 }
 0x8d8   :  { %2037 = vtanh.f32 %v2722_v56 }
 0x8d9   :  { %v602_v53 = vpop.permute.xlu1 %601  ;;  %2039 = vtanh.f32 %v1134_v3 }
 0x8da   :  { %v604_v25 = vadd.f32 %v602_v53, %v600_v23 }
 0x8dc   :  { %606 = vrot.lane.b32.xlu1 %v604_v25, %s2248_s27 }
 0x8e5   :  { %v2038_v29 = vpop.eup %2037 }
 0x8e6   :  { %1155 = vrot.lane.b32.xlu0 %v2038_v29, %s2234_s6  ;;  %v2040_v1 = vpop.eup %2039 }
 0x8e7   :  { %v1138_v5 = vmul.f32 0.5, %v2040_v1 }
 0x8e9   :  { %v1140_v8 = vadd.f32 0.5, %v1138_v5 }
 0x90c   :  { %v277_v31 = vpop.permute.xlu0 %276 }
 0x90d   :  { %279 = vst.msk [vmem:[#allocation2 + $0x18] sm:$0xff] %vm95_vm0, %v277_v31 }
 0x912   :  { %v341_v2 = vpop.permute.xlu0 %340  ;;  %v339_v30 = vpop.permute.xlu1 %338 }
 0x913   :  { %v342_v33 = vsel %vm299_vm4, %v339_v30, %v341_v2 }
 0x914   :  { %344 = vst.msk [vmem:[#allocation2 + $0x20] sm:$0xff] %vm95_vm0, %v342_v33  ;;  %v613_v54 = vld [vmem:[#allocation2 + $0x18] sm:$0xff] }
 0x915   :  { %1952 = vmatmul.mubr.msk.f32.gmra.mxu0 %vm95_vm0, %v613_v54 }
 0x916   :  { %773 = vmatprep.mubr.f32.mxu0 %v2233_v44 }
 0x918   :  { %v387_v27 = vpop.permute.xlu1 %386 }
 0x919   :  { %389 = vst.msk [vmem:[#allocation2 + $0x28] sm:$0xff] %vm95_vm0, %v387_v27 }
 0x91b   :  { %v614_v35 = vld [vmem:[#allocation2 + $0x20] sm:$0xff] }
 0x91c   :  { %v449_v37 = vpop.permute.xlu0 %448  ;;  %1953 = vmatmul.mubr.msk.f32.gmra.mxu0 %vm95_vm0, %v614_v35  ;;  %v451_v39 = vpop.permute.xlu1 %450 }
 0x91d   :  { %v452_v41 = vsel %vm409_vm5, %v449_v37, %v451_v39  ;;  %779 = vmatprep.mubr.f32.mxu0 %v2233_v44 }
 0x91e   :  { %454 = vst.msk [vmem:[#allocation2 + $0x30] sm:$0xff] %vm95_vm0, %v452_v41 }
 0x920   :  { %v497_v43 = vpop.permute.xlu0 %496  ;;  %v615_v58 = vld [vmem:[#allocation2 + $0x28] sm:$0xff] }
 0x921   :  { %499 = vst.msk [vmem:[#allocation2 + $0x38] sm:$0xff] %vm95_vm0, %v497_v43  ;;  %1954 = vmatmul.mubr.msk.f32.gmra.mxu0 %vm95_vm0, %v615_v58 }
 0x922   :  { %785 = vmatprep.mubr.f32.mxu0 %v2233_v44 }
 0x924   :  { %v561_v13 = vpop.permute.xlu0 %560  ;;  %v559_v59 = vpop.permute.xlu1 %558 }
 0x925   :  { %v562_v60 = vsel %vm519_vm6, %v559_v59, %v561_v13  ;;  %v616_v61 = vld [vmem:[#allocation2 + $0x30] sm:$0xff] }
 0x926   :  { %564 = vst.msk [vmem:[#allocation2 + $0x40] sm:$0xff] %vm95_vm0, %v562_v60  ;;  %1955 = vmatmul.mubr.msk.f32.gmra.mxu0 %vm95_vm0, %v616_v61 }
 0x927   :  { %791 = vmatprep.mubr.f32.mxu0 %v2233_v44 }
 0x928   :  { %v617_v62 = vld [vmem:[#allocation2 + $0x38] sm:$0xff] }
 0x92a   :  { %1956 = vmatmul.mubr.msk.f32.gmra.mxu0 %vm95_vm0, %v617_v62 }
 0x92b   :  { %797 = vmatprep.mubr.f32.mxu0 %v2233_v44 }
 0x92d   :  { %v618_v11 = vld [vmem:[#allocation2 + $0x40] sm:$0xff] }
 0x92e   :  { %1957 = vmatmul.mubr.msk.f32.gmra.mxu0 %vm95_vm0, %v618_v11 }
 0x92f   :  { %803 = vmatprep.mubr.f32.mxu0 %v2233_v44 }
 0x94e   :  { %v607_v4 = vpop.permute.xlu1 %606 }
 0x94f   :  { %609 = vst.msk [vmem:[#allocation2 + $0x48] sm:$0xff] %vm95_vm0, %v607_v4 }
 0x956   :  { %v619_v26 = vld [vmem:[#allocation2 + $0x48] sm:$0xff] }
 0x957   :  { %1958 = vmatmul.mubr.msk.f32.gmra.mxu0 %vm95_vm0, %v619_v26 }
 0x958   :  { %v1156_v28 = vpop.permute.xlu0 %1155  ;;  %1228 = vmatprep.mubr.f32.mxu0 %v2233_v44 }
 0x959   :  { %v1158_v9 = vmul.f32 %v1156_v28, %v1140_v8 }
 0x95b   :  { %1961 = vmatmul.mubr.msk.f32.vlgmr.msra.gmra.mxu0 %vm848_vm2, %v1158_v9 }
 0x95c   :  { %1389 = vmatpush1.msra.mxu0 %v2753_v10  ;;  %1436 = vmatprep.mubr.f32.mxu0 %v2233_v44 }
 0x95d   :  { %1390 = vmatprep.subr.mxu0 %v2757_v57 }
 0x95e   :  { %1391 = vmatpush1.msra.mxu0 %v2760_v12 }
 0x95f   :  { %1392 = vmatprep.subr.mxu0 %v2763_v14 }
 0x960   :  { %1393 = vmatpush1.msra.mxu0 %v2766_v42 }
 0x961   :  { %1394 = vmatprep.subr.mxu0 %v2769_v16 }
 0x962   :  { %1395 = vmatpush1.msra.mxu0 %v2772_v18 }
 0x963   :  { %1396 = vmatprep.subr.mxu0 %v2775_v24 }
 0x964   :  { %1397 = vmatpush1.msra.mxu0 %v2778_v22 }
 0x965   :  { %1398 = vmatprep.subr.mxu0 %v2781_v32 }
 0x966   :  { %1399 = vmatpush1.msra.mxu0 %v2784_v36 }
 0x967   :  { %1400 = vmatprep.subr.mxu0 %v2787_v34 }
 0x968   :  { %1401 = vmatpush1.msra.mxu0 %v2790_v38 }
 0x969   :  { %1402 = vmatprep.subr.mxu0 %v2793_v40 }
 0x96a   :  { %1403 = vmatpush1.msra.mxu0 %v2796_v46 }
 0x96b   :  { %1596 = vmatprep.subr.mxu0 %v2799_v47 }
 0x9d5   :  { %v769_v45 = vpop.f32.mrf.mxu0 }
 0x9d6   :  { %v770_v23 = vadd.f32 %v769_v45, %v2436_v63 }
 0x9d7   :  { %v771_v51 = vpop.f32.mrf.mxu0 }
 0x9d8   :  { %v772_v25 = vadd.f32 %v771_v51, %v2441_v7 }
 0x9dc   :  { %v775_v20 = vpop.f32.mrf.mxu0 }
 0x9de   :  { %v777_v6 = vpop.f32.mrf.mxu0 }
 0x9df   :  { %v778_v1 = vadd.f32 %v777_v6, %v2441_v7 }
 0x9e1   :  { %v2802_v48 = vpop.f32.mrf.mxu0 }
 0x9e3   :  { %v2804_v0 = vpop.f32.mrf.mxu0 }
 0x9e6   :  { %v2806_v49 = vpop.f32.mrf.mxu0 }
 0x9e8   :  { %v2808_v15 = vpop.f32.mrf.mxu0 }
 0x9ea   :  { %v2810_v50 = vpop.f32.mrf.mxu0 }
 0x9ec   :  { %v2812_v52 = vpop.f32.mrf.mxu0 }
 0x9ee   :  { %v2814_v17 = vpop.f32.mrf.mxu0 }
 0x9f0   :  { %v2816_v55 = vpop.f32.mrf.mxu0 }
 0xa17   :  { %v2818_v19 = vpop.f32.mrf.mxu0 }
 0xa19   :  { %v2820_v21 = vpop.f32.mrf.mxu0 }
 0xa1b   :  { %v1230_v53 = vpop.f32.mrf.mxu0 }
 0xa1c   :  { %v1235_v29 = vadd.f32 %v1230_v53, %v770_v23 }
 0xa1d   :  { %v1232_v31 = vpop.f32.mrf.mxu0 }
 0xa1e   :  { %v1236_v2 = vadd.f32 %v1232_v31, %v772_v25  ;;  %v1237_v33 = vmul.f32 0.5, %v1235_v29 }
 0xa20   :  { %2041 = vtanh.f32 %v1236_v2  ;;  %v1238_v59 = vmul.f32 0.5, %v1236_v2 }
 0xa21   :  { %2043 = vtanh.f32 %v1237_v33 }
 0xa2d   :  { %v2042_v30 = vpop.eup %2041 }
 0xa2e   :  { %1248 = vrot.lane.b32.xlu1 %v2042_v30, %s2234_s6  ;;  %v2044_v54 = vpop.eup %2043 }
 0xa2f   :  { %v1241_v27 = vmul.f32 0.5, %v2044_v54 }
 0xa31   :  { %v1243_v35 = vadd.f32 0.5, %v1241_v27 }
 0xa33   :  { %v1246_v41 = vmul.f32 %v1243_v35, %v2722_v56  ;;  %v776_v56 = vadd.f32 %v775_v20, %v2436_v63 }
 0xaa0   :  { %v1249_v37 = vpop.permute.xlu1 %1248 }
 0xaa1   :  { %v1251_v39 = vmul.f32 %v1249_v37, %v1243_v35  ;;  %v782_v37 = vadd.f32 %v2802_v48, %v2436_v63 }
 0xaa3   :  { %1253 = vrot.lane.b32.xlu0 %v1251_v39, %s2234_s6 }
 0xb15   :  { %v1254_v43 = vpop.permute.xlu0 %1253 }
 0xb16   :  { %v1256_v58 = vadd.f32 %v1254_v43, %v1246_v41  ;;  %v784_v41 = vadd.f32 %v2804_v0, %v2441_v7 }
 0xb18   :  { %2045 = vtanh.f32 %v1256_v58 }
 0xb19   :  { %2047 = vtanh.f32 %v1238_v59 }
 0xb25   :  { %v2046_v13 = vpop.eup %2045 }
 0xb26   :  { %1259 = vrot.lane.b32.xlu1 %v2046_v13, %s2234_s6  ;;  %v2048_v60 = vpop.eup %2047 }
 0xb27   :  { %v1242_v61 = vmul.f32 0.5, %v2048_v60 }
 0xb29   :  { %v1244_v62 = vadd.f32 0.5, %v1242_v61 }
 0xb98   :  { %v1260_v11 = vpop.permute.xlu1 %1259 }
 0xb99   :  { %v1262_v3 = vmul.f32 %v1260_v11, %v1244_v62 }
 0xb9b   :  { %1962 = vmatmul.mubr.msk.f32.vlgmr.msra.gmra.mxu1 %vm848_vm2, %v1262_v3 }
 0xb9c   :  { %1493 = vmatpush1.msra.mxu1 %v2753_v10  ;;  %1540 = vmatprep.mubr.f32.mxu1 %v2233_v44 }
 0xb9d   :  { %1494 = vmatprep.subr.mxu1 %v2757_v57 }
 0xb9e   :  { %1495 = vmatpush1.msra.mxu1 %v2760_v12 }
 0xb9f   :  { %1496 = vmatprep.subr.mxu1 %v2763_v14 }
 0xba0   :  { %1497 = vmatpush1.msra.mxu1 %v2766_v42 }
 0xba1   :  { %1498 = vmatprep.subr.mxu1 %v2769_v16 }
 0xba2   :  { %1499 = vmatpush1.msra.mxu1 %v2772_v18 }
 0xba3   :  { %1500 = vmatprep.subr.mxu1 %v2775_v24 }
 0xba4   :  { %1501 = vmatpush1.msra.mxu1 %v2778_v22 }
 0xba5   :  { %1502 = vmatprep.subr.mxu1 %v2781_v32 }
 0xba6   :  { %1503 = vmatpush1.msra.mxu1 %v2784_v36 }
 0xba7   :  { %1504 = vmatprep.subr.mxu1 %v2787_v34 }
 0xba8   :  { %1505 = vmatpush1.msra.mxu1 %v2790_v38 }
 0xba9   :  { %1506 = vmatprep.subr.mxu1 %v2793_v40 }
 0xbaa   :  { %1507 = vmatpush1.msra.mxu1 %v2796_v46 }
 0xbab   :  { %1700 = vmatprep.subr.mxu1 %v2799_v47 }
 0xc5b   :  { %v1334_v4 = vpop.f32.mrf.mxu1 }
 0xc5c   :  { %v1339_v5 = vadd.f32 %v1334_v4, %v776_v56 }
 0xc5d   :  { %v1336_v26 = vpop.f32.mrf.mxu1 }
 0xc5e   :  { %v1340_v8 = vadd.f32 %v1336_v26, %v778_v1  ;;  %v1341_v9 = vmul.f32 0.5, %v1339_v5 }
 0xc60   :  { %2049 = vtanh.f32 %v1340_v8  ;;  %v1342_v2 = vmul.f32 0.5, %v1340_v8 }
 0xc61   :  { %2051 = vtanh.f32 %v1341_v9 }
 0xc6d   :  { %v2050_v28 = vpop.eup %2049 }
 0xc6e   :  { %1352 = vrot.lane.b32.xlu0 %v2050_v28, %s2234_s6  ;;  %v2052_v45 = vpop.eup %2051 }
 0xc6f   :  { %v1345_v51 = vmul.f32 0.5, %v2052_v45  ;;  %v788_v45 = vadd.f32 %v2806_v49, %v2436_v63 }
 0xc71   :  { %v1347_v23 = vadd.f32 0.5, %v1345_v51 }
 0xc73   :  { %v1350_v20 = vmul.f32 %v1347_v23, %v1256_v58 }
 0xce0   :  { %v1353_v53 = vpop.permute.xlu0 %1352 }
 0xce1   :  { %v1355_v25 = vmul.f32 %v1353_v53, %v1347_v23  ;;  %v790_v23 = vadd.f32 %v2808_v15, %v2441_v7 }
 0xce3   :  { %1357 = vrot.lane.b32.xlu1 %v1355_v25, %s2234_s6 }
 0xd55   :  { %v1358_v29 = vpop.permute.xlu1 %1357 }
 0xd56   :  { %v1360_v31 = vadd.f32 %v1358_v29, %v1350_v20 }
 0xd58   :  { %2053 = vtanh.f32 %v1360_v31 }
 0xd59   :  { %2055 = vtanh.f32 %v1342_v2 }
 0xd65   :  { %v2054_v6 = vpop.eup %2053 }
 0xd66   :  { %1363 = vrot.lane.b32.xlu0 %v2054_v6, %s2234_s6  ;;  %v2056_v30 = vpop.eup %2055 }
 0xd67   :  { %v1346_v33 = vmul.f32 0.5, %v2056_v30 }
 0xd69   :  { %v1348_v54 = vadd.f32 0.5, %v1346_v33 }
 0xdd8   :  { %v1364_v27 = vpop.permute.xlu0 %1363 }
 0xdd9   :  { %v1366_v35 = vmul.f32 %v1364_v27, %v1348_v54 }
 0xddb   :  { %1963 = vmatmul.mubr.msk.f32.vlgmr.msra.gmra.mxu0 %vm848_vm2, %v1366_v35 }
 0xddc   :  { %1597 = vmatpush1.msra.mxu0 %v2753_v10  ;;  %1644 = vmatprep.mubr.f32.mxu0 %v2233_v44 }
 0xddd   :  { %1598 = vmatprep.subr.mxu0 %v2757_v57 }
 0xdde   :  { %1599 = vmatpush1.msra.mxu0 %v2760_v12 }
 0xddf   :  { %1600 = vmatprep.subr.mxu0 %v2763_v14 }
 0xde0   :  { %1601 = vmatpush1.msra.mxu0 %v2766_v42 }
 0xde1   :  { %1602 = vmatprep.subr.mxu0 %v2769_v16 }
 0xde2   :  { %1603 = vmatpush1.msra.mxu0 %v2772_v18 }
 0xde3   :  { %1604 = vmatprep.subr.mxu0 %v2775_v24 }
 0xde4   :  { %1605 = vmatpush1.msra.mxu0 %v2778_v22 }
 0xde5   :  { %1606 = vmatprep.subr.mxu0 %v2781_v32 }
 0xde6   :  { %1607 = vmatpush1.msra.mxu0 %v2784_v36 }
 0xde7   :  { %1608 = vmatprep.subr.mxu0 %v2787_v34 }
 0xde8   :  { %1609 = vmatpush1.msra.mxu0 %v2790_v38 }
 0xde9   :  { %1610 = vmatprep.subr.mxu0 %v2793_v40 }
 0xdea   :  { %1611 = vmatpush1.msra.mxu0 %v2796_v46 }
 0xdeb   :  { %1804 = vmatprep.subr.mxu0 %v2799_v47 }
 0xe9b   :  { %v1438_v39 = vpop.f32.mrf.mxu0 }
 0xe9c   :  { %v1443_v43 = vadd.f32 %v1438_v39, %v782_v37 }
 0xe9d   :  { %v1440_v58 = vpop.f32.mrf.mxu0 }
 0xe9e   :  { %v1444_v13 = vadd.f32 %v1440_v58, %v784_v41  ;;  %v1445_v60 = vmul.f32 0.5, %v1443_v43 }
 0xea0   :  { %2057 = vtanh.f32 %v1444_v13  ;;  %v1446_v1 = vmul.f32 0.5, %v1444_v13 }
 0xea1   :  { %2059 = vtanh.f32 %v1445_v60 }
 0xead   :  { %v2058_v59 = vpop.eup %2057 }
 0xeae   :  { %1456 = vrot.lane.b32.xlu1 %v2058_v59, %s2234_s6  ;;  %v2060_v61 = vpop.eup %2059 }
 0xeaf   :  { %v1449_v62 = vmul.f32 0.5, %v2060_v61 }
 0xeb1   :  { %v1451_v11 = vadd.f32 0.5, %v1449_v62 }
 0xeb3   :  { %v1454_v48 = vmul.f32 %v1451_v11, %v1360_v31 }
 0xf20   :  { %v1457_v47 = vpop.permute.xlu1 %1456 }
 0xf21   :  { %v1459_v3 = vmul.f32 %v1457_v47, %v1451_v11  ;;  %v800_v47 = vadd.f32 %v2814_v17, %v2436_v63 }
 0xf23   :  { %1461 = vrot.lane.b32.xlu0 %v1459_v3, %s2234_s6 }
 0xf95   :  { %v1462_v56 = vpop.permute.xlu0 %1461 }
 0xf96   :  { %v1464_v4 = vadd.f32 %v1462_v56, %v1454_v48  ;;  %v802_v48 = vadd.f32 %v2816_v55, %v2441_v7 }
 0xf98   :  { %2061 = vtanh.f32 %v1464_v4 }
 0xf99   :  { %2063 = vtanh.f32 %v1446_v1 }
 0xfa5   :  { %v2062_v0 = vpop.eup %2061 }
 0xfa6   :  { %1467 = vrot.lane.b32.xlu1 %v2062_v0, %s2234_s6  ;;  %v2064_v5 = vpop.eup %2063 }
 0xfa7   :  { %v1450_v26 = vmul.f32 0.5, %v2064_v5 }
 0xfa9   :  { %v1452_v8 = vadd.f32 0.5, %v1450_v26 }
0x1018   :  { %v1468_v28 = vpop.permute.xlu1 %1467 }
0x1019   :  { %v1470_v9 = vmul.f32 %v1468_v28, %v1452_v8 }
0x101b   :  { %1964 = vmatmul.mubr.msk.f32.vlgmr.msra.gmra.mxu1 %vm848_vm2, %v1470_v9 }
0x101c   :  { %1701 = vmatpush1.msra.mxu1 %v2753_v10  ;;  %1748 = vmatprep.mubr.f32.mxu1 %v2233_v44 }
0x101d   :  { %1702 = vmatprep.subr.mxu1 %v2757_v57 }
0x101e   :  { %1703 = vmatpush1.msra.mxu1 %v2760_v12 }
0x101f   :  { %1704 = vmatprep.subr.mxu1 %v2763_v14 }
0x1020   :  { %1705 = vmatpush1.msra.mxu1 %v2766_v42 }
0x1021   :  { %1706 = vmatprep.subr.mxu1 %v2769_v16 }
0x1022   :  { %1707 = vmatpush1.msra.mxu1 %v2772_v18 }
0x1023   :  { %1708 = vmatprep.subr.mxu1 %v2775_v24 }
0x1024   :  { %1709 = vmatpush1.msra.mxu1 %v2778_v22 }
0x1025   :  { %1710 = vmatprep.subr.mxu1 %v2781_v32 }
0x1026   :  { %1711 = vmatpush1.msra.mxu1 %v2784_v36 }
0x1027   :  { %1712 = vmatprep.subr.mxu1 %v2787_v34 }
0x1028   :  { %1713 = vmatpush1.msra.mxu1 %v2790_v38 }
0x1029   :  { %1714 = vmatprep.subr.mxu1 %v2793_v40 }
0x102a   :  { %1715 = vmatpush1.msra.mxu1 %v2796_v46 }
0x10db   :  { %v1542_v51 = vpop.f32.mrf.mxu1 }
0x10dc   :  { %v1547_v53 = vadd.f32 %v1542_v51, %v788_v45 }
0x10dd   :  { %v1544_v25 = vpop.f32.mrf.mxu1 }
0x10de   :  { %v1548_v20 = vadd.f32 %v1544_v25, %v790_v23  ;;  %v1549_v31 = vmul.f32 0.5, %v1547_v53 }
0x10e0   :  { %2065 = vtanh.f32 %v1548_v20  ;;  %v1550_v37 = vmul.f32 0.5, %v1548_v20 }
0x10e1   :  { %2067 = vtanh.f32 %v1549_v31 }
0x10ed   :  { %v2066_v29 = vpop.eup %2065 }
0x10ee   :  { %1560 = vrot.lane.b32.xlu0 %v2066_v29, %s2234_s6  ;;  %v2068_v6 = vpop.eup %2067 }
0x10ef   :  { %v1553_v2 = vmul.f32 0.5, %v2068_v6 }
0x10f1   :  { %v1555_v30 = vadd.f32 0.5, %v1553_v2  ;;  %v806_v2 = vadd.f32 %v2818_v19, %v2436_v63 }
0x10f3   :  { %v1558_v49 = vmul.f32 %v1555_v30, %v1464_v4 }
0x1160   :  { %v1561_v33 = vpop.permute.xlu0 %1560 }
0x1161   :  { %v1563_v54 = vmul.f32 %v1561_v33, %v1555_v30  ;;  %v808_v33 = vadd.f32 %v2820_v21, %v2441_v7 }
0x1163   :  { %1565 = vrot.lane.b32.xlu1 %v1563_v54, %s2234_s6 }
0x11d5   :  { %v1566_v27 = vpop.permute.xlu1 %1565 }
0x11d6   :  { %v1568_v35 = vadd.f32 %v1566_v27, %v1558_v49 }
0x11d8   :  { %2069 = vtanh.f32 %v1568_v35 }
0x11d9   :  { %2071 = vtanh.f32 %v1550_v37 }
0x11e5   :  { %v2070_v15 = vpop.eup %2069 }
0x11e6   :  { %1571 = vrot.lane.b32.xlu0 %v2070_v15, %s2234_s6  ;;  %v2072_v39 = vpop.eup %2071 }
0x11e7   :  { %v1554_v41 = vmul.f32 0.5, %v2072_v39 }
0x11e9   :  { %v1556_v43 = vadd.f32 0.5, %v1554_v41 }
0x1258   :  { %v1572_v58 = vpop.permute.xlu0 %1571 }
0x1259   :  { %v1574_v13 = vmul.f32 %v1572_v58, %v1556_v43 }
0x125b   :  { %1965 = vmatmul.mubr.msk.f32.vlgmr.msra.gmra.mxu0 %vm848_vm2, %v1574_v13 }
0x125c   :  { %1805 = vmatpush1.msra.mxu0 %v2753_v10  ;;  %1852 = vmatprep.mubr.f32.mxu0 %v2233_v44  ;;  %v794_v44 = vadd.f32 %v2810_v50, %v2436_v63 }
0x125d   :  { %1806 = vmatprep.subr.mxu0 %v2757_v57  ;;  %v796_v57 = vadd.f32 %v2812_v52, %v2441_v7 }
0x125e   :  { %1807 = vmatpush1.msra.mxu0 %v2760_v12 }
0x125f   :  { %1808 = vmatprep.subr.mxu0 %v2763_v14 }
0x1260   :  { %1809 = vmatpush1.msra.mxu0 %v2766_v42 }
0x1261   :  { %1810 = vmatprep.subr.mxu0 %v2769_v16 }
0x1262   :  { %1811 = vmatpush1.msra.mxu0 %v2772_v18 }
0x1263   :  { %1812 = vmatprep.subr.mxu0 %v2775_v24 }
0x1264   :  { %1813 = vmatpush1.msra.mxu0 %v2778_v22 }
0x1265   :  { %1814 = vmatprep.subr.mxu0 %v2781_v32 }
0x1266   :  { %1815 = vmatpush1.msra.mxu0 %v2784_v36 }
0x1267   :  { %1816 = vmatprep.subr.mxu0 %v2787_v34 }
0x1268   :  { %1817 = vmatpush1.msra.mxu0 %v2790_v38 }
0x1269   :  { %1818 = vmatprep.subr.mxu0 %v2793_v40 }
0x126a   :  { %1819 = vmatpush1.msra.mxu0 %v2796_v46 }
0x131b   :  { %v1646_v10 = vpop.f32.mrf.mxu0 }
0x131c   :  { %v1651_v12 = vadd.f32 %v1646_v10, %v794_v44 }
0x131d   :  { %v1648_v14 = vpop.f32.mrf.mxu0 }
0x131e   :  { %v1652_v42 = vadd.f32 %v1648_v14, %v796_v57  ;;  %v1653_v18 = vmul.f32 0.5, %v1651_v12 }
0x1320   :  { %2073 = vtanh.f32 %v1652_v42  ;;  %v1654_v52 = vmul.f32 0.5, %v1652_v42 }
0x1321   :  { %2075 = vtanh.f32 %v1653_v18 }
0x132d   :  { %v2074_v16 = vpop.eup %2073 }
0x132e   :  { %1664 = vrot.lane.b32.xlu1 %v2074_v16, %s2234_s6  ;;  %v2076_v24 = vpop.eup %2075 }
0x132f   :  { %v1657_v22 = vmul.f32 0.5, %v2076_v24 }
0x1331   :  { %v1659_v32 = vadd.f32 0.5, %v1657_v22 }
0x1333   :  { %v1662_v38 = vmul.f32 %v1659_v32, %v1568_v35 }
0x13a0   :  { %v1665_v36 = vpop.permute.xlu1 %1664 }
0x13a1   :  { %v1667_v34 = vmul.f32 %v1665_v36, %v1659_v32 }
0x13a3   :  { %1669 = vrot.lane.b32.xlu0 %v1667_v34, %s2234_s6 }
0x1415   :  { %v1670_v40 = vpop.permute.xlu0 %1669 }
0x1416   :  { %v1672_v46 = vadd.f32 %v1670_v40, %v1662_v38 }
0x1418   :  { %2077 = vtanh.f32 %v1672_v46 }
0x1419   :  { %2079 = vtanh.f32 %v1654_v52  ;;  %v1969_v52 = vld [vmem:[%s2960_s8] ss:$0 sm:$0xff] }
0x1425   :  { %v2078_v50 = vpop.eup %2077 }
0x1426   :  { %1675 = vrot.lane.b32.xlu1 %v2078_v50, %s2234_s6  ;;  %v2080_v59 = vpop.eup %2079 }
0x1427   :  { %v1658_v60 = vmul.f32 0.5, %v2080_v59 }
0x1429   :  { %v1660_v61 = vadd.f32 0.5, %v1658_v60 }
0x1498   :  { %v1676_v62 = vpop.permute.xlu1 %1675 }
0x1499   :  { %v1678_v11 = vmul.f32 %v1676_v62, %v1660_v61 }
0x149b   :  { %1966 = vmatmul.mubr.msk.f32.vlgmr.msra.gmra.mxu1 %vm848_vm2, %v1678_v11 }
0x155b   :  { %v1750_v3 = vpop.f32.mrf.mxu1 }
0x155c   :  { %v1755_v56 = vadd.f32 %v1750_v3, %v800_v47 }
0x155d   :  { %v1752_v4 = vpop.f32.mrf.mxu1 }
0x155e   :  { %v1756_v0 = vadd.f32 %v1752_v4, %v802_v48  ;;  %v1757_v5 = vmul.f32 0.5, %v1755_v56 }
0x1560   :  { %2081 = vtanh.f32 %v1756_v0  ;;  %v1758_v53 = vmul.f32 0.5, %v1756_v0 }
0x1561   :  { %2083 = vtanh.f32 %v1757_v5 }
0x156d   :  { %v2082_v1 = vpop.eup %2081 }
0x156e   :  { %1768 = vrot.lane.b32.xlu0 %v2082_v1, %s2234_s6  ;;  %v2084_v26 = vpop.eup %2083 }
0x156f   :  { %v1761_v8 = vmul.f32 0.5, %v2084_v26 }
0x1571   :  { %v1763_v28 = vadd.f32 0.5, %v1761_v8 }
0x1573   :  { %v1766_v17 = vmul.f32 %v1763_v28, %v1672_v46  ;;  %v1968_v46 = vld [vmem:[%s2959_s7] ss:$0 sm:$0xff] }
0x15e0   :  { %v1769_v9 = vpop.permute.xlu0 %1768 }
0x15e1   :  { %v1771_v45 = vmul.f32 %v1769_v9, %v1763_v28 }
0x15e3   :  { %1773 = vrot.lane.b32.xlu1 %v1771_v45, %s2234_s6 }
0x1655   :  { %v1774_v51 = vpop.permute.xlu1 %1773 }
0x1656   :  { %v1776_v23 = vadd.f32 %v1774_v51, %v1766_v17 }
0x1658   :  { %2085 = vtanh.f32 %v1776_v23 }
0x1659   :  { %2087 = vtanh.f32 %v1758_v53 }
0x1665   :  { %v2086_v55 = vpop.eup %2085 }
0x1666   :  { %1779 = vrot.lane.b32.xlu0 %v2086_v55, %s2234_s6  ;;  %v2088_v25 = vpop.eup %2087 }
0x1667   :  { %v1762_v20 = vmul.f32 0.5, %v2088_v25 }
0x1669   :  { %v1764_v29 = vadd.f32 0.5, %v1762_v20 }
0x16d8   :  { %v1780_v31 = vpop.permute.xlu0 %1779 }
0x16d9   :  { %v1782_v6 = vmul.f32 %v1780_v31, %v1764_v29 }
0x16db   :  { %1967 = vmatmul.mubr.msk.f32.vlgmr.msra.gmra.mxu0 %vm848_vm2, %v1782_v6 }
0x179b   :  { %v1854_v30 = vpop.f32.mrf.mxu0 }
0x179c   :  { %v1859_v54 = vadd.f32 %v1854_v30, %v806_v2 }
0x179d   :  { %v1856_v49 = vpop.f32.mrf.mxu0 }
0x179e   :  { %v1860_v27 = vadd.f32 %v1856_v49, %v808_v33  ;;  %v1861_v15 = vmul.f32 0.5, %v1859_v54 }
0x17a0   :  { %2089 = vtanh.f32 %v1860_v27  ;;  %v1862_v21 = vmul.f32 0.5, %v1860_v27 }
0x17a1   :  { %2091 = vtanh.f32 %v1861_v15 }
0x17ad   :  { %v2090_v35 = vpop.eup %2089 }
0x17ae   :  { %1872 = vrot.lane.b32.xlu1 %v2090_v35, %s2234_s6  ;;  %v2092_v37 = vpop.eup %2091 }
0x17af   :  { %v1865_v39 = vmul.f32 0.5, %v2092_v37 }
0x17b1   :  { %v1867_v41 = vadd.f32 0.5, %v1865_v39 }
0x17b3   :  { %v1870_v63 = vmul.f32 %v1867_v41, %v1776_v23 }
0x1820   :  { %v1873_v43 = vpop.permute.xlu1 %1872 }
0x1821   :  { %v1875_v58 = vmul.f32 %v1873_v43, %v1867_v41 }
0x1823   :  { %1877 = vrot.lane.b32.xlu0 %v1875_v58, %s2234_s6 }
0x1895   :  { %v1878_v19 = vpop.permute.xlu0 %1877 }
0x1896   :  { %v1880_v13 = vadd.f32 %v1878_v19, %v1870_v63 }
0x1898   :  { %2093 = vtanh.f32 %v1880_v13 }
0x1899   :  { %2095 = vtanh.f32 %v1862_v21 }
0x18a5   :  { %v2094_v7 = vpop.eup %2093 }
0x18a6   :  { %1883 = vrot.lane.b32.xlu1 %v2094_v7, %s2234_s6  ;;  %v2096_v44 = vpop.eup %2095 }
0x18a7   :  { %v1866_v10 = vmul.f32 0.5, %v2096_v44 }
0x18a9   :  { %v1868_v57 = vadd.f32 0.5, %v1866_v10 }
0x1918   :  { %v1884_v12 = vpop.permute.xlu1 %1883 }
0x1919   :  { %v1886_v14 = vmul.f32 %v1884_v12, %v1868_v57 }
0x191b   :  { %v1887_v42 = vsel %vm848_vm2, %v1886_v14, 0.0 }
0x191c   :  { %1888 = vadd.xlane.f32.xlu0 %v1887_v42 }
0x19a5   :  { %v1889_v16 = vpop.xlane.xlu0 %1888 }
0x19a6   :  { %v1891_v18 = vmul.f32 0.015625, %v1889_v16 }
0x19a8   :  { %v1892_v24 = vsub.f32 %v1886_v14, %v1891_v18 }
0x19aa   :  { %v1893_v22 = vmul.f32 %v1892_v24, %v1892_v24 }
0x19ac   :  { %v1894_v32 = vsel %vm848_vm2, %v1893_v22, 0.0 }
0x19ad   :  { %1895 = vadd.xlane.f32.xlu1 %v1894_v32 }
0x1a36   :  { %v1896_v36 = vpop.xlane.xlu1 %1895 }
0x1a37   :  { %v1897_v34 = vmul.f32 0.015625, %v1896_v36 }
0x1a39   :  { %v1898_v38 = vadd.f32 1e-05, %v1897_v34 }
0x1a3b   :  { %2097 = vrsqrt.f32 %v1898_v38 }
0x1a48   :  { %v2098_v40 = vpop.eup %2097 }
0x1a49   :  { %v1900_v50 = vmul.f32 %v2098_v40, %v1892_v24 }
0x1a4b   :  { %v1908_v59 = vmul.f32 %v1968_v46, %v1900_v50 }
0x1a4d   :  { %v1916_v60 = vadd.f32 %v1969_v52, %v1908_v59 }
0x1a4f   :  { %1917 = vst.msk [vmem:[#allocation12] sm:$0xff] %vm848_vm2, %v1916_v60 }
0x1a50   :  { %2206 = shalt.err (!%p2203_p10)
}
0x1a51   :  { %1927 = dma.vmem_to_hbm [thread:$0]  %s1925_s4, 128, %s2961_s9, [#allocation6]  }
0x1a52   :  { %2221 = dma.done.wait [#allocation6], 128  }
0x1a53   :  { %2222 = vsyncadd [#allocation6], 4294967168 }
0x1a54   :  { %1931 = vsyncpa [#allocation5], 1 }
0x1a55   :  { %1932 = vsyncpa [#allocation8], 1 }
0x1a56   :  { %1933 = vsyncpa [#allocation11], 1 }
0x1a57   :  { %1934 = vsyncpa [#allocation6], 1 }

</bundles_post_ra>
